<compile_context>
chip_gen: v7x
topology: tpu7x:2x2x1
jax: 0.10.0
libtpu: 0.0.40
codegen_flags: <defaults>
</compile_context>

<pallas_src>
import functools

import jax
import jax.numpy as jnp
from jax import lax
from jax.experimental import pallas as pl
from jax.experimental.pallas import tpu as pltpu


def _calc_output_size(insize: int, kernel: int, stride: int) -> int:
    return int((insize - (kernel - 1) - 1) / stride) + 1


def _round_up(x: int, m: int) -> int:
    return ((x + m - 1) // m) * m


def _geometry(H: int, W: int, k: int) -> dict:
    """Static row-index bookkeeping for the shifted-matmul / in-place pooling."""
    OH1, OW1 = H - k + 1, W - k + 1            # conv1 valid output
    P1h, P1w = OH1 // 2, OW1 // 2              # pool1 output
    OH2, OW2 = P1h - k + 1, P1w - k + 1        # conv2 valid output
    Hp2, Wp2 = OH2 // 2, OW2 // 2              # pool2 output (floor mode)

    M1 = OH1 * OW1                             # dense conv1 rows (row = i*OW1 + j)
    S1 = 2 * OW1                               # pooled1 row stride in q1 space
    M2 = S1 * (OH2 - 1) + 2 * (OW2 - 1) + 1    # conv2 rows (sparse layout)
    R1w = S1 * (k - 1) + M2                    # rows of the kw-fused pooled1 buffer
    R1 = R1w + 2 * (k - 1)                     # q1 rows referenced overall
    S2 = 2 * S1                                # pooled2 row stride in q2 space
    R2 = S2 * (Hp2 - 1) + 4 * (Wp2 - 1) + 1    # q2 rows referenced by fc1

    # Static in-bounds proofs for every shifted slice used in the kernel.
    assert R1 + OW1 <= M1 - 1, "pool1/conv2 slices must stay inside conv1 output"
    assert R2 + S1 + 1 <= M2 - 1, "pool2 slices must stay inside conv2 output"

    return dict(OH1=OH1, OW1=OW1, Hp2=Hp2, Wp2=Wp2,
                M1=M1, S1=S1, M2=M2, R1w=R1w, S2=S2, R2=R2)


# ---------------------------------------------------------------------------
# Fused Pallas kernel (B images per grid step)
# ---------------------------------------------------------------------------
def _make_lenet_kernel(*, B, k, geo, C1, C2):
    OW1, M1 = geo["OW1"], geo["M1"]
    S1, S2 = geo["S1"], geo["S2"]
    M2, R1w, R2 = geo["M2"], geo["R1w"], geo["R2"]
    Hp2, Wp2 = geo["Hp2"], geo["Wp2"]

    def kernel(x_ref, w1_ref, b1_ref, w2_ref, b2_ref,
               wf1_ref, bf1_ref, wf2_ref, bf2_ref, out_ref,
               y1_ref, q1w_ref, y2_ref, q2_ref, flat_ref):
        f32 = jnp.float32

        # Per-image conv/pool stages (B is small and static); fc layers run
        # once per grid step on the whole (B, ...) block.
        for b in range(B):
            # ---- conv1 + bias + ReLU: ONE MXU push (input already im2col'd)
            y1_ref[...] = jnp.maximum(
                jnp.dot(x_ref[b], w1_ref[...], preferred_element_type=f32)
                + b1_ref[...], 0.0)                                  # (M1, C1)

            # ---- maxpool1 (2x2/2) fused with the kw gather for conv2:
            # q1w[r, kw*C1:(kw+1)*C1] = max of the 2x2 window whose flat
            # top-left row (dense OH1 x OW1 layout) is r + 2*kw.
            parts = []
            for kw in range(k):
                o = 2 * kw
                parts.append(jnp.maximum(
                    jnp.maximum(y1_ref[o:o + R1w, :],
                                y1_ref[o + 1:o + 1 + R1w, :]),
                    jnp.maximum(y1_ref[o + OW1:o + OW1 + R1w, :],
                                y1_ref[o + OW1 + 1:o + OW1 + 1 + R1w, :])))
            q1w_ref[...] = jnp.concatenate(parts, axis=1)            # (R1w, k*C1)

            # ---- conv2 + bias + ReLU: k pushes with K = k*C1 (kw taps fused)
            # output (oh2, ow2) lives at row S1*oh2 + 2*ow2 of y2.
            acc2 = jnp.zeros((M2, C2), f32)
            for kh in range(k):
                acc2 = acc2 + jnp.dot(q1w_ref[S1 * kh:S1 * kh + M2, :],
                                      w2_ref[kh],
                                      preferred_element_type=f32)
            y2_ref[...] = jnp.maximum(acc2 + b2_ref[...], 0.0)       # (M2, C2)

            # ---- maxpool2 (2x2/2, floor): pooled2(h, w) lives at q2[S2*h+4*w]
            q2_ref[...] = jnp.maximum(
                jnp.maximum(y2_ref[0:R2, :], y2_ref[2:R2 + 2, :]),
                jnp.maximum(y2_ref[S1:R2 + S1, :],
                            y2_ref[S1 + 2:R2 + S1 + 2, :]))          # (R2, C2)

            # ---- gather the Hp2*Wp2 pooled positions into ONE dense fc1 row
            # (lane order matches torch's NCHW flatten via wf1's relayout).
            row = jnp.concatenate(
                [q2_ref[S2 * h + 4 * w:S2 * h + 4 * w + 1, :]
                 for h in range(Hp2) for w in range(Wp2)], axis=1)   # (1, P*C2)
            flat_ref[b:b + 1, :] = row

        # ---- fc1 + ReLU and fc2: single batched matmuls over the image block
        z1 = jnp.maximum(
            jnp.dot(flat_ref[...], wf1_ref[...], preferred_element_type=f32)
            + bf1_ref[...], 0.0)                                     # (B, F1)
        z2 = jnp.dot(z1, wf2_ref[...], preferred_element_type=f32) + bf2_ref[...]
        out_ref[0] = z2                      # one lane-dense (B, NC_pad) store

    return kernel


# ---------------------------------------------------------------------------
# Host-side wrappers
# ---------------------------------------------------------------------------
def init_lenet_params(key, num_classes, size_input, kernel):
    """Parameters in the original PyTorch layouts."""
    num_features, H, W = size_input
    H1, W1 = _calc_output_size(H, kernel, 1), _calc_output_size(W, kernel, 1)
    H1, W1 = _calc_output_size(H1, 2, 2), _calc_output_size(W1, 2, 2)
    H2, W2 = _calc_output_size(H1, kernel, 1), _calc_output_size(W1, kernel, 1)
    H2, W2 = _calc_output_size(H2, 2, 2), _calc_output_size(W2, 2, 2)
    size_flatten = 50 * H2 * W2

    ks = jax.random.split(key, 8)
    s = 0.05
    params = {
        "conv1_w": s * jax.random.normal(ks[0], (20, num_features, kernel, kernel), jnp.float32),
        "conv1_b": s * jax.random.normal(ks[1], (20,), jnp.float32),
        "conv2_w": s * jax.random.normal(ks[2], (50, 20, kernel, kernel), jnp.float32),
        "conv2_b": s * jax.random.normal(ks[3], (50,), jnp.float32),
        "fc1_w": s * jax.random.normal(ks[4], (500, size_flatten), jnp.float32),
        "fc1_b": s * jax.random.normal(ks[5], (500,), jnp.float32),
        "fc2_w": s * jax.random.normal(ks[6], (num_classes, 500), jnp.float32),
        "fc2_b": s * jax.random.normal(ks[7], (num_classes,), jnp.float32),
    }
    return params, size_flatten, (H2, W2)


def prepare_params(params, *, kernel, pooled2_hw):
    """One-time weight re-layout for the fused kernel (hoisted out of forward)."""
    k = kernel
    Hp2, Wp2 = pooled2_hw
    c1w, c2w = params["conv1_w"], params["conv2_w"]
    f1w, f2w = params["fc1_w"], params["fc2_w"]
    C1, C_in = c1w.shape[0], c1w.shape[1]
    C2 = c2w.shape[0]
    F1 = f1w.shape[0]
    NC = f2w.shape[0]
    NCp = _round_up(NC, 128)                    # lane-dense fc2 output

    wf2 = jnp.zeros((F1, NCp), jnp.float32).at[:, :NC].set(jnp.transpose(f2w, (1, 0)))
    bf2 = jnp.zeros((1, NCp), jnp.float32).at[0, :NC].set(params["fc2_b"])

    prepared = {
        # conv1: (kh, kw, ci, co) flattened to (k*k*Cin, C1) -> single matmul.
        "w1": jnp.transpose(c1w, (2, 3, 1, 0)).reshape(k * k * C_in, C1),
        "b1": params["conv1_b"].reshape(1, C1),
        # conv2: one (k*C1, C2) block per kh, rows ordered (kw, ci).
        "w2": jnp.transpose(c2w, (2, 3, 1, 0)).reshape(k, k * C1, C2),
        "b2": params["conv2_b"].reshape(1, C2),
        # fc1: (Hp2*Wp2*C2, 500), input-feature order (h, w, c) to match the
        # kernel's per-position gather; equals torch's NCHW flatten order.
        "wf1": jnp.transpose(f1w.reshape(F1, C2, Hp2, Wp2),
                             (2, 3, 1, 0)).reshape(Hp2 * Wp2 * C2, F1),
        "bf1": params["fc1_b"].reshape(1, F1),
        # fc2: transposed and zero-padded to a full 128-lane output block.
        "wf2": wf2,
        "bf2": bf2,
    }
    return jax.tree_util.tree_map(lambda a: a.astype(jnp.float32), prepared)


@functools.partial(jax.jit, static_argnames=("kernel", "num_classes"))
def lenet_forward(x, prepared, *, kernel, num_classes):
    N, C_in, H, W = x.shape
    k = kernel
    geo = _geometry(H, W, k)
    OH1, OW1, M1 = geo["OH1"], geo["OW1"], geo["M1"]
    C1 = prepared["w1"].shape[1]
    C2 = prepared["w2"].shape[2]
    NCp = prepared["bf2"].shape[1]
    P = geo["Hp2"] * geo["Wp2"]
    KC1 = k * k * C_in

    # Images per grid step: batch within a step (amortize per-step overhead,
    # fc matmuls get M=B rows) while keeping >= 2 "parallel" steps so v7x's
    # two TensorCores both get work.  VMEM is never the constraint here.
    B = 1 if N <= 1 else min(8, -(-N // 2))
    num_steps = -(-N // B)
    N_pad = num_steps * B

    # Wrapper-side im2col of the tiny raw input: conv1 becomes one K=k*k*C_in
    # matmul and the kernel's input block is lane-dense (36 lanes vs 4).
    x_nhwc = jnp.transpose(x, (0, 2, 3, 1)).astype(jnp.float32)
    x_col = jnp.concatenate(
        [x_nhwc[:, kh:kh + OH1, kw:kw + OW1, :]
         for kh in range(k) for kw in range(k)],
        axis=-1).reshape(N, M1, KC1)
    if N_pad != N:
        x_col = jnp.pad(x_col, ((0, N_pad - N), (0, 0), (0, 0)))

    kern = _make_lenet_kernel(B=B, k=k, geo=geo, C1=C1, C2=C2)

    out = pl.pallas_call(
        kern,
        out_shape=jax.ShapeDtypeStruct((num_steps, B, NCp), jnp.float32),
        grid=(num_steps,),
        in_specs=[
            pl.BlockSpec((B, M1, KC1), lambda n: (n, 0, 0)),
            pl.BlockSpec(prepared["w1"].shape, lambda n: (0, 0)),
            pl.BlockSpec(prepared["b1"].shape, lambda n: (0, 0)),
            pl.BlockSpec(prepared["w2"].shape, lambda n: (0, 0, 0)),
            pl.BlockSpec(prepared["b2"].shape, lambda n: (0, 0)),
            pl.BlockSpec(prepared["wf1"].shape, lambda n: (0, 0)),
            pl.BlockSpec(prepared["bf1"].shape, lambda n: (0, 0)),
            pl.BlockSpec(prepared["wf2"].shape, lambda n: (0, 0)),
            pl.BlockSpec(prepared["bf2"].shape, lambda n: (0, 0)),
        ],
        out_specs=pl.BlockSpec((1, B, NCp), lambda n: (n, 0, 0)),
        scratch_shapes=[
            pltpu.VMEM((geo["M1"], C1), jnp.float32),       # y1: conv1+relu
            pltpu.VMEM((geo["R1w"], k * C1), jnp.float32),  # kw-fused pooled1
            pltpu.VMEM((geo["M2"], C2), jnp.float32),       # y2: conv2+relu
            pltpu.VMEM((geo["R2"], C2), jnp.float32),       # pool2 windows
            pltpu.VMEM((B, P * C2), jnp.float32),           # dense fc1 inputs
        ],
        compiler_params=pltpu.CompilerParams(
            dimension_semantics=("parallel",)),
    )(x_col, prepared["w1"], prepared["b1"], prepared["w2"], prepared["b2"],
      prepared["wf1"], prepared["bf1"], prepared["wf2"], prepared["bf2"])

    return out.reshape(N_pad, NCp)[:N, :num_classes]


# ---------------------------------------------------------------------------
# Pure-JAX reference (mirrors the PyTorch module) for a correctness check
# ---------------------------------------------------------------------------
def lenet_reference(x, params, size_flatten):
    with jax.default_matmul_precision("float32"):
        def conv(a, w, b):
            y = lax.conv_general_dilated(
                a, w, window_strides=(1, 1), padding="VALID",
                dimension_numbers=("NCHW", "OIHW", "NCHW"))
            return y + b[None, :, None, None]

        def maxpool2(a):
            return lax.reduce_window(a, -jnp.inf, lax.max,
                                     (1, 1, 2, 2), (1, 1, 2, 2), "VALID")

        y = jax.nn.relu(conv(x, params["conv1_w"], params["conv1_b"]))
        y = maxpool2(y)
        y = jax.nn.relu(conv(y, params["conv2_w"], params["conv2_b"]))
        y = maxpool2(y)
        y = y.reshape(-1, size_flatten)
        y = jax.nn.relu(y @ params["fc1_w"].T + params["fc1_b"])
        return y @ params["fc2_w"].T + params["fc2_b"]


if __name__ == "__main__":
    key = jax.random.PRNGKey(0)
    kx, kp = jax.random.split(key)

    # Small shapes consistent with the module: batch=2, C=4, 16x16, kernel=3.
    N, C, H, W = 2, 4, 16, 16
    kernel = 3
    num_classes = 10

    x = jax.random.normal(kx, (N, C, H, W), jnp.float32)
    params, size_flatten, pooled2_hw = init_lenet_params(
        kp, num_classes, (C, H, W), kernel)
    prepared = prepare_params(params, kernel=kernel, pooled2_hw=pooled2_hw)

    out = lenet_forward(x, prepared, kernel=kernel, num_classes=num_classes)
    out = jax.block_until_ready(out)

    assert out.shape == (N, num_classes), out.shape
    assert out.dtype == jnp.float32
    assert bool(jnp.all(jnp.isfinite(out)))

    ref = lenet_reference(x, params, size_flatten)
    assert bool(jnp.allclose(out, ref, atol=5e-3, rtol=5e-3)), (
        "max abs err = %f" % float(jnp.max(jnp.abs(out - ref))))

    print("KERNEL_OK")
</pallas_src>

<mosaic_0001>
module attributes {stable_mosaic.version = 11 : i64} {
  func.func @kernel(%arg0: i32, %arg1: memref<1x196x36xf32, #tpu.memory_space<vmem>>, %arg2: memref<36x20xf32, #tpu.memory_space<vmem>>, %arg3: memref<1x20xf32, #tpu.memory_space<vmem>>, %arg4: memref<3x60x50xf32, #tpu.memory_space<vmem>>, %arg5: memref<1x50xf32, #tpu.memory_space<vmem>>, %arg6: memref<200x500xf32, #tpu.memory_space<vmem>>, %arg7: memref<1x500xf32, #tpu.memory_space<vmem>>, %arg8: memref<500x128xf32, #tpu.memory_space<vmem>>, %arg9: memref<1x128xf32, #tpu.memory_space<vmem>>, %arg10: memref<1x1x128xf32, #tpu.memory_space<vmem>>, %arg11: memref<196x20xf32, #tpu.memory_space<vmem>>, %arg12: memref<177x60xf32, #tpu.memory_space<vmem>>, %arg13: memref<121x50xf32, #tpu.memory_space<vmem>>, %arg14: memref<61x50xf32, #tpu.memory_space<vmem>>, %arg15: memref<1x200xf32, #tpu.memory_space<vmem>>) attributes {dimension_semantics = [#tpu.dimension_semantics<parallel>], iteration_bounds = array<i64: 2>, scalar_prefetch = 0 : i64, scratch_operands = 5 : i64, tpu.core_type = #tpu.core_type<tc>, window_params = [{transform_indices = @transform_0, window_bounds = array<i64: 1, 196, 36>}, {pipeline_mode = #tpu.pipeline_mode<synchronous>, transform_indices = @transform_1, window_bounds = array<i64: 36, 20>}, {pipeline_mode = #tpu.pipeline_mode<synchronous>, transform_indices = @transform_2, window_bounds = array<i64: 1, 20>}, {pipeline_mode = #tpu.pipeline_mode<synchronous>, transform_indices = @transform_3, window_bounds = array<i64: 3, 60, 50>}, {pipeline_mode = #tpu.pipeline_mode<synchronous>, transform_indices = @transform_4, window_bounds = array<i64: 1, 50>}, {pipeline_mode = #tpu.pipeline_mode<synchronous>, transform_indices = @transform_5, window_bounds = array<i64: 200, 500>}, {pipeline_mode = #tpu.pipeline_mode<synchronous>, transform_indices = @transform_6, window_bounds = array<i64: 1, 500>}, {pipeline_mode = #tpu.pipeline_mode<synchronous>, transform_indices = @transform_7, window_bounds = array<i64: 500, 128>}, {pipeline_mode = #tpu.pipeline_mode<synchronous>, transform_indices = @transform_8, window_bounds = array<i64: 1, 128>}, {transform_indices = @transform_9, window_bounds = array<i64: 1, 1, 128>}]} {
    %c0 = arith.constant 0 : index
    %c0_0 = arith.constant 0 : index
    %c0_1 = arith.constant 0 : index
    %0 = vector.load %arg1[%c0, %c0_0, %c0_1] : memref<1x196x36xf32, #tpu.memory_space<vmem>>, vector<1x196x36xf32>
    %1 = vector.shape_cast %0 : vector<1x196x36xf32> to vector<196x36xf32>
    %c0_2 = arith.constant 0 : index
    %c0_3 = arith.constant 0 : index
    %2 = vector.load %arg2[%c0_2, %c0_3] : memref<36x20xf32, #tpu.memory_space<vmem>>, vector<36x20xf32>
    %cst = arith.constant dense<0.000000e+00> : vector<196x20xf32>
    %3 = tpu.matmul %1, %2, %cst {dimension_numbers = #tpu.dot_dimension_numbers<[1], [0], [0], [1], [0, 0, 1, 1], [], []>} : vector<196x36xf32>, vector<36x20xf32>, vector<196x20xf32> -> vector<196x20xf32>
    %c0_4 = arith.constant 0 : index
    %c0_5 = arith.constant 0 : index
    %4 = vector.load %arg3[%c0_4, %c0_5] : memref<1x20xf32, #tpu.memory_space<vmem>>, vector<1x20xf32>
    %5 = vector.broadcast %4 : vector<1x20xf32> to vector<196x20xf32>
    %6 = arith.addf %3, %5 : vector<196x20xf32>
    %cst_6 = arith.constant 0.000000e+00 : f32
    %7 = vector.broadcast %cst_6 : f32 to vector<196x20xf32>
    %8 = arith.maximumf %6, %7 : vector<196x20xf32>
    %c0_7 = arith.constant 0 : index
    %c0_8 = arith.constant 0 : index
    %9 = vector.load %arg11[%c0_7, %c0_8] : memref<196x20xf32, #tpu.memory_space<vmem>>, vector<196x20xf32>
    tpu.vector_store %arg11[%c0_7, %c0_8], %8 {strides = array<i32>} : memref<196x20xf32, #tpu.memory_space<vmem>>, vector<196x20xf32>,
    %c0_9 = arith.constant 0 : index
    %c0_10 = arith.constant 0 : index
    %10 = vector.load %arg11[%c0_9, %c0_10] : memref<196x20xf32, #tpu.memory_space<vmem>>, vector<177x20xf32>
    %c1 = arith.constant 1 : index
    %c0_11 = arith.constant 0 : index
    %11 = vector.load %arg11[%c1, %c0_11] : memref<196x20xf32, #tpu.memory_space<vmem>>, vector<177x20xf32>
    %12 = arith.maximumf %10, %11 : vector<177x20xf32>
    %c14 = arith.constant 14 : index
    %c0_12 = arith.constant 0 : index
    %13 = vector.load %arg11[%c14, %c0_12] : memref<196x20xf32, #tpu.memory_space<vmem>>, vector<177x20xf32>
    %c15 = arith.constant 15 : index
    %c0_13 = arith.constant 0 : index
    %14 = vector.load %arg11[%c15, %c0_13] : memref<196x20xf32, #tpu.memory_space<vmem>>, vector<177x20xf32>
    %15 = arith.maximumf %13, %14 : vector<177x20xf32>
    %16 = arith.maximumf %12, %15 : vector<177x20xf32>
    %c2 = arith.constant 2 : index
    %c0_14 = arith.constant 0 : index
    %17 = vector.load %arg11[%c2, %c0_14] : memref<196x20xf32, #tpu.memory_space<vmem>>, vector<177x20xf32>
    %c3 = arith.constant 3 : index
    %c0_15 = arith.constant 0 : index
    %18 = vector.load %arg11[%c3, %c0_15] : memref<196x20xf32, #tpu.memory_space<vmem>>, vector<177x20xf32>
    %19 = arith.maximumf %17, %18 : vector<177x20xf32>
    %c16 = arith.constant 16 : index
    %c0_16 = arith.constant 0 : index
    %20 = vector.load %arg11[%c16, %c0_16] : memref<196x20xf32, #tpu.memory_space<vmem>>, vector<177x20xf32>
    %c17 = arith.constant 17 : index
    %c0_17 = arith.constant 0 : index
    %21 = vector.load %arg11[%c17, %c0_17] : memref<196x20xf32, #tpu.memory_space<vmem>>, vector<177x20xf32>
    %22 = arith.maximumf %20, %21 : vector<177x20xf32>
    %23 = arith.maximumf %19, %22 : vector<177x20xf32>
    %c4 = arith.constant 4 : index
    %c0_18 = arith.constant 0 : index
    %24 = vector.load %arg11[%c4, %c0_18] : memref<196x20xf32, #tpu.memory_space<vmem>>, vector<177x20xf32>
    %c5 = arith.constant 5 : index
    %c0_19 = arith.constant 0 : index
    %25 = vector.load %arg11[%c5, %c0_19] : memref<196x20xf32, #tpu.memory_space<vmem>>, vector<177x20xf32>
    %26 = arith.maximumf %24, %25 : vector<177x20xf32>
    %c18 = arith.constant 18 : index
    %c0_20 = arith.constant 0 : index
    %27 = vector.load %arg11[%c18, %c0_20] : memref<196x20xf32, #tpu.memory_space<vmem>>, vector<177x20xf32>
    %c19 = arith.constant 19 : index
    %c0_21 = arith.constant 0 : index
    %28 = vector.load %arg11[%c19, %c0_21] : memref<196x20xf32, #tpu.memory_space<vmem>>, vector<177x20xf32>
    %29 = arith.maximumf %27, %28 : vector<177x20xf32>
    %30 = arith.maximumf %26, %29 : vector<177x20xf32>
    %31 = tpu.concatenate %16, %23, %30 in 1 : vector<177x20xf32>, vector<177x20xf32>, vector<177x20xf32> -> vector<177x60xf32>
    %c0_22 = arith.constant 0 : index
    %c0_23 = arith.constant 0 : index
    %32 = vector.load %arg12[%c0_22, %c0_23] : memref<177x60xf32, #tpu.memory_space<vmem>>, vector<177x60xf32>
    tpu.vector_store %arg12[%c0_22, %c0_23], %31 {strides = array<i32>} : memref<177x60xf32, #tpu.memory_space<vmem>>, vector<177x60xf32>,
    %cst_24 = arith.constant 0.000000e+00 : f32
    %33 = vector.broadcast %cst_24 : f32 to vector<121x50xf32>
    %c0_25 = arith.constant 0 : index
    %c0_26 = arith.constant 0 : index
    %34 = vector.load %arg12[%c0_25, %c0_26] : memref<177x60xf32, #tpu.memory_space<vmem>>, vector<121x60xf32>
    %c0_27 = arith.constant 0 : index
    %c0_28 = arith.constant 0 : index
    %c0_29 = arith.constant 0 : index
    %35 = vector.load %arg4[%c0_27, %c0_28, %c0_29] : memref<3x60x50xf32, #tpu.memory_space<vmem>>, vector<1x60x50xf32>
    %36 = vector.shape_cast %35 : vector<1x60x50xf32> to vector<60x50xf32>
    %cst_30 = arith.constant dense<0.000000e+00> : vector<121x50xf32>
    %37 = tpu.matmul %34, %36, %cst_30 {dimension_numbers = #tpu.dot_dimension_numbers<[1], [0], [0], [1], [0, 0, 1, 1], [], []>} : vector<121x60xf32>, vector<60x50xf32>, vector<121x50xf32> -> vector<121x50xf32>
    %38 = arith.addf %33, %37 : vector<121x50xf32>
    %c28 = arith.constant 28 : index
    %c0_31 = arith.constant 0 : index
    %39 = vector.load %arg12[%c28, %c0_31] : memref<177x60xf32, #tpu.memory_space<vmem>>, vector<121x60xf32>
    %c1_32 = arith.constant 1 : index
    %c0_33 = arith.constant 0 : index
    %c0_34 = arith.constant 0 : index
    %40 = vector.load %arg4[%c1_32, %c0_33, %c0_34] : memref<3x60x50xf32, #tpu.memory_space<vmem>>, vector<1x60x50xf32>
    %41 = vector.shape_cast %40 : vector<1x60x50xf32> to vector<60x50xf32>
    %cst_35 = arith.constant dense<0.000000e+00> : vector<121x50xf32>
    %42 = tpu.matmul %39, %41, %cst_35 {dimension_numbers = #tpu.dot_dimension_numbers<[1], [0], [0], [1], [0, 0, 1, 1], [], []>} : vector<121x60xf32>, vector<60x50xf32>, vector<121x50xf32> -> vector<121x50xf32>
    %43 = arith.addf %38, %42 : vector<121x50xf32>
    %c56 = arith.constant 56 : index
    %c0_36 = arith.constant 0 : index
    %44 = vector.load %arg12[%c56, %c0_36] : memref<177x60xf32, #tpu.memory_space<vmem>>, vector<121x60xf32>
    %c2_37 = arith.constant 2 : index
    %c0_38 = arith.constant 0 : index
    %c0_39 = arith.constant 0 : index
    %45 = vector.load %arg4[%c2_37, %c0_38, %c0_39] : memref<3x60x50xf32, #tpu.memory_space<vmem>>, vector<1x60x50xf32>
    %46 = vector.shape_cast %45 : vector<1x60x50xf32> to vector<60x50xf32>
    %cst_40 = arith.constant dense<0.000000e+00> : vector<121x50xf32>
    %47 = tpu.matmul %44, %46, %cst_40 {dimension_numbers = #tpu.dot_dimension_numbers<[1], [0], [0], [1], [0, 0, 1, 1], [], []>} : vector<121x60xf32>, vector<60x50xf32>, vector<121x50xf32> -> vector<121x50xf32>
    %48 = arith.addf %43, %47 : vector<121x50xf32>
    %c0_41 = arith.constant 0 : index
    %c0_42 = arith.constant 0 : index
    %49 = vector.load %arg5[%c0_41, %c0_42] : memref<1x50xf32, #tpu.memory_space<vmem>>, vector<1x50xf32>
    %50 = vector.broadcast %49 : vector<1x50xf32> to vector<121x50xf32>
    %51 = arith.addf %48, %50 : vector<121x50xf32>
    %cst_43 = arith.constant 0.000000e+00 : f32
    %52 = vector.broadcast %cst_43 : f32 to vector<121x50xf32>
    %53 = arith.maximumf %51, %52 : vector<121x50xf32>
    %c0_44 = arith.constant 0 : index
    %c0_45 = arith.constant 0 : index
    %54 = vector.load %arg13[%c0_44, %c0_45] : memref<121x50xf32, #tpu.memory_space<vmem>>, vector<121x50xf32>
    tpu.vector_store %arg13[%c0_44, %c0_45], %53 {strides = array<i32>} : memref<121x50xf32, #tpu.memory_space<vmem>>, vector<121x50xf32>,
    %c0_46 = arith.constant 0 : index
    %c0_47 = arith.constant 0 : index
    %55 = vector.load %arg13[%c0_46, %c0_47] : memref<121x50xf32, #tpu.memory_space<vmem>>, vector<61x50xf32>
    %c2_48 = arith.constant 2 : index
    %c0_49 = arith.constant 0 : index
    %56 = vector.load %arg13[%c2_48, %c0_49] : memref<121x50xf32, #tpu.memory_space<vmem>>, vector<61x50xf32>
    %57 = arith.maximumf %55, %56 : vector<61x50xf32>
    %c28_50 = arith.constant 28 : index
    %c0_51 = arith.constant 0 : index
    %58 = vector.load %arg13[%c28_50, %c0_51] : memref<121x50xf32, #tpu.memory_space<vmem>>, vector<61x50xf32>
    %c30 = arith.constant 30 : index
    %c0_52 = arith.constant 0 : index
    %59 = vector.load %arg13[%c30, %c0_52] : memref<121x50xf32, #tpu.memory_space<vmem>>, vector<61x50xf32>
    %60 = arith.maximumf %58, %59 : vector<61x50xf32>
    %61 = arith.maximumf %57, %60 : vector<61x50xf32>
    %c0_53 = arith.constant 0 : index
    %c0_54 = arith.constant 0 : index
    %62 = vector.load %arg14[%c0_53, %c0_54] : memref<61x50xf32, #tpu.memory_space<vmem>>, vector<61x50xf32>
    tpu.vector_store %arg14[%c0_53, %c0_54], %61 {strides = array<i32>} : memref<61x50xf32, #tpu.memory_space<vmem>>, vector<61x50xf32>,
    %c0_55 = arith.constant 0 : index
    %c0_56 = arith.constant 0 : index
    %63 = vector.load %arg14[%c0_55, %c0_56] : memref<61x50xf32, #tpu.memory_space<vmem>>, vector<1x50xf32>
    %c4_57 = arith.constant 4 : index
    %c0_58 = arith.constant 0 : index
    %64 = vector.load %arg14[%c4_57, %c0_58] : memref<61x50xf32, #tpu.memory_space<vmem>>, vector<1x50xf32>
    %c56_59 = arith.constant 56 : index
    %c0_60 = arith.constant 0 : index
    %65 = vector.load %arg14[%c56_59, %c0_60] : memref<61x50xf32, #tpu.memory_space<vmem>>, vector<1x50xf32>
    %c60 = arith.constant 60 : index
    %c0_61 = arith.constant 0 : index
    %66 = vector.load %arg14[%c60, %c0_61] : memref<61x50xf32, #tpu.memory_space<vmem>>, vector<1x50xf32>
    %67 = tpu.concatenate %63, %64, %65, %66 in 1 : vector<1x50xf32>, vector<1x50xf32>, vector<1x50xf32>, vector<1x50xf32> -> vector<1x200xf32>
    %c0_62 = arith.constant 0 : index
    %c0_63 = arith.constant 0 : index
    %68 = vector.load %arg15[%c0_62, %c0_63] : memref<1x200xf32, #tpu.memory_space<vmem>>, vector<1x200xf32>
    tpu.vector_store %arg15[%c0_62, %c0_63], %67 {strides = array<i32>} : memref<1x200xf32, #tpu.memory_space<vmem>>, vector<1x200xf32>,
    %c0_64 = arith.constant 0 : index
    %c0_65 = arith.constant 0 : index
    %69 = vector.load %arg15[%c0_64, %c0_65] : memref<1x200xf32, #tpu.memory_space<vmem>>, vector<1x200xf32>
    %c0_66 = arith.constant 0 : index
    %c0_67 = arith.constant 0 : index
    %70 = vector.load %arg6[%c0_66, %c0_67] : memref<200x500xf32, #tpu.memory_space<vmem>>, vector<200x500xf32>
    %cst_68 = arith.constant dense<0.000000e+00> : vector<1x500xf32>
    %71 = tpu.matmul %69, %70, %cst_68 {dimension_numbers = #tpu.dot_dimension_numbers<[1], [0], [0], [1], [0, 0, 1, 1], [], []>} : vector<1x200xf32>, vector<200x500xf32>, vector<1x500xf32> -> vector<1x500xf32>
    %c0_69 = arith.constant 0 : index
    %c0_70 = arith.constant 0 : index
    %72 = vector.load %arg7[%c0_69, %c0_70] : memref<1x500xf32, #tpu.memory_space<vmem>>, vector<1x500xf32>
    %73 = arith.addf %71, %72 : vector<1x500xf32>
    %cst_71 = arith.constant 0.000000e+00 : f32
    %74 = vector.broadcast %cst_71 : f32 to vector<1x500xf32>
    %75 = arith.maximumf %73, %74 : vector<1x500xf32>
    %c0_72 = arith.constant 0 : index
    %c0_73 = arith.constant 0 : index
    %76 = vector.load %arg8[%c0_72, %c0_73] : memref<500x128xf32, #tpu.memory_space<vmem>>, vector<500x128xf32>
    %cst_74 = arith.constant dense<0.000000e+00> : vector<1x128xf32>
    %77 = tpu.matmul %75, %76, %cst_74 {dimension_numbers = #tpu.dot_dimension_numbers<[1], [0], [0], [1], [0, 0, 1, 1], [], []>} : vector<1x500xf32>, vector<500x128xf32>, vector<1x128xf32> -> vector<1x128xf32>
    %c0_75 = arith.constant 0 : index
    %c0_76 = arith.constant 0 : index
    %78 = vector.load %arg9[%c0_75, %c0_76] : memref<1x128xf32, #tpu.memory_space<vmem>>, vector<1x128xf32>
    %79 = arith.addf %77, %78 : vector<1x128xf32>
    %c0_77 = arith.constant 0 : index
    %c0_78 = arith.constant 0 : index
    %c0_79 = arith.constant 0 : index
    %80 = vector.load %arg10[%c0_77, %c0_78, %c0_79] : memref<1x1x128xf32, #tpu.memory_space<vmem>>, vector<1x1x128xf32>
    %81 = vector.shape_cast %80 : vector<1x1x128xf32> to vector<1x128xf32>
    %82 = vector.shape_cast %79 : vector<1x128xf32> to vector<1x1x128xf32>
    tpu.vector_store %arg10[%c0_77, %c0_78, %c0_79], %82 {strides = array<i32>} : memref<1x1x128xf32, #tpu.memory_space<vmem>>, vector<1x1x128xf32>,
    return
  }
  func.func @transform_0(%arg0: i32) -> (i32, i32, i32) {
    %c0_i32 = arith.constant 0 : i32
    %c0_i32_0 = arith.constant 0 : i32
    %c0_i32_1 = arith.constant 0 : i32
    return %arg0, %c0_i32, %c0_i32_0 : i32, i32, i32
  }
  func.func @transform_1(%arg0: i32) -> (i32, i32) {
    %c0_i32 = arith.constant 0 : i32
    %c0_i32_0 = arith.constant 0 : i32
    %c0_i32_1 = arith.constant 0 : i32
    return %c0_i32, %c0_i32_0 : i32, i32
  }
  func.func @transform_2(%arg0: i32) -> (i32, i32) {
    %c0_i32 = arith.constant 0 : i32
    %c0_i32_0 = arith.constant 0 : i32
    %c0_i32_1 = arith.constant 0 : i32
    return %c0_i32, %c0_i32_0 : i32, i32
  }
  func.func @transform_3(%arg0: i32) -> (i32, i32, i32) {
    %c0_i32 = arith.constant 0 : i32
    %c0_i32_0 = arith.constant 0 : i32
    %c0_i32_1 = arith.constant 0 : i32
    %c0_i32_2 = arith.constant 0 : i32
    return %c0_i32, %c0_i32_0, %c0_i32_1 : i32, i32, i32
  }
  func.func @transform_4(%arg0: i32) -> (i32, i32) {
    %c0_i32 = arith.constant 0 : i32
    %c0_i32_0 = arith.constant 0 : i32
    %c0_i32_1 = arith.constant 0 : i32
    return %c0_i32, %c0_i32_0 : i32, i32
  }
  func.func @transform_5(%arg0: i32) -> (i32, i32) {
    %c0_i32 = arith.constant 0 : i32
    %c0_i32_0 = arith.constant 0 : i32
    %c0_i32_1 = arith.constant 0 : i32
    return %c0_i32, %c0_i32_0 : i32, i32
  }
  func.func @transform_6(%arg0: i32) -> (i32, i32) {
    %c0_i32 = arith.constant 0 : i32
    %c0_i32_0 = arith.constant 0 : i32
    %c0_i32_1 = arith.constant 0 : i32
    return %c0_i32, %c0_i32_0 : i32, i32
  }
  func.func @transform_7(%arg0: i32) -> (i32, i32) {
    %c0_i32 = arith.constant 0 : i32
    %c0_i32_0 = arith.constant 0 : i32
    %c0_i32_1 = arith.constant 0 : i32
    return %c0_i32, %c0_i32_0 : i32, i32
  }
  func.func @transform_8(%arg0: i32) -> (i32, i32) {
    %c0_i32 = arith.constant 0 : i32
    %c0_i32_0 = arith.constant 0 : i32
    %c0_i32_1 = arith.constant 0 : i32
    return %c0_i32, %c0_i32_0 : i32, i32
  }
  func.func @transform_9(%arg0: i32) -> (i32, i32, i32) {
    %c0_i32 = arith.constant 0 : i32
    %c0_i32_0 = arith.constant 0 : i32
    %c0_i32_1 = arith.constant 0 : i32
    return %arg0, %c0_i32, %c0_i32_0 : i32, i32, i32
  }
}

</mosaic_0001>

<bundles_post_ra>
// kernel: lenet_forward.1
= control target key start
LH: loop header
LB: loop body
LE: loop exit
PB: predicated region body
PF: predicated region fallthrough
CT: control target
= control target key end

     0   :  { %14 = vsyncpa [#allocation8], 0  ;;  %s4778_s0 = inlined_call_operand.vmem [shape: f32[2,196,36], index: 0, kind: input, shape index: {}]   ;;  %s4779_s1 = inlined_call_operand.vmem [shape: f32[36,20], index: 1, kind: input, shape index: {}]   ;;  %s4780_s2 = inlined_call_operand.vmem [shape: f32[1,20], index: 2, kind: input, shape index: {}]   ;;  %s4781_s3 = inlined_call_operand.vmem [shape: f32[3,60,50], index: 3, kind: input, shape index: {}]   ;;  %s4782_s4 = inlined_call_operand.vmem [shape: f32[1,50], index: 4, kind: input, shape index: {}]   ;;  %s4783_s5 = inlined_call_operand.vmem [shape: f32[200,500], index: 5, kind: input, shape index: {}]   ;;  %s4784_s6 = inlined_call_operand.vmem [shape: f32[1,500], index: 6, kind: input, shape index: {}]   ;;  %s4785_s7 = inlined_call_operand.vmem [shape: f32[500,128], index: 7, kind: input, shape index: {}]   ;;  %s4786_s8 = inlined_call_operand.vmem [shape: f32[1,128], index: 8, kind: input, shape index: {}]   ;;  %s4787_s9 = inlined_call_operand.hbm [shape: f32[2,1,128], index: 9, kind: output, shape index: {}]  }
   0x1   :  { %16 = vsyncpa [#allocation8 + $0x1], 0  ;;  %s3604_s30 = smov 0   ;;  %s3606_s10 = smov 0  }
   0x2   :  { %s3608_s11 = smov 0   ;;  %s3610_s12 = smov 0  }
   0x3 LB: > { %s3625_s13 = sadd.s32 4294967295, %s3541_s12   ;;  %s2714_s14 = sadd.s32 4294967294, %s3541_s12   ;;  %s3541_s12 = sphi %s3610_s12, %s4801_s12   ;;  %s3537_s11 = sphi %s3608_s11, %s4800_s11   ;;  %s3533_s10 = sphi %s3606_s10, %s4799_s10   ;;  %s3529_s30 = sphi %s3604_s30, %s4798_s30  }
   0x4   : > { %s3629_s15 = sadd.s32 1, %s3541_s12   ;;  %s223_s16 = sadd.s32 1, %s3537_s11 }
   0x5   : > { %s220_s17 = ssub.s32 %s3541_s12, %s3629_s15  ;;  %p233_p0 = scmp.ne.s32.totalorder %s3537_s11, %s3533_s10 }
   0x6   : > { %p221_p1 = scmp.eq.s32.totalorder %s220_s17, 0  ;;  %p234_p2 = scmp.eq.s32.totalorder %s3625_s13, 1 }
   0x7   : > { %p239_p3 = scmp.ne.s32.totalorder %s3533_s10, %s3529_s30  ;;  %p240_p4 = scmp.eq.s32.totalorder %s2714_s14, 1 }
   0x8   : > { %s3640_s18 = scalar_select %p221_p1, %s3537_s11, %s223_s16  }
   0x9   : > { %p3642_p5 = por %p234_p2, %p233_p0  ;;  %p3646_p6 = por %p240_p4, %p239_p3 }
   0xa   : > { %p2717_p7 = scmp.ge.s32.totalorder %s3541_s12, 1  ;;  %p290_p8 = scmp.lt.s32.totalorder %s3541_s12, 3 }
   0xc   : > { %p291_p9 = pnand %p2717_p7, %p290_p8 }
   0xd   : > { %v355_v0 = vld [vmem:[%s4779_s1] sm:$0xff] (!%p291_p9)  ;;  %v356_v1 = vld [vmem:[%s4779_s1 + $0x8] sm:$0xff] (!%p291_p9)  ;;  %v357_v2 = vld [vmem:[%s4779_s1 + $0x10] sm:$0xff] (!%p291_p9)  ;;  %v3543_v3 = vmov (!%p291_p9), 0.0|0.0   ;;  %p325_p10 = scmp.lt.s32.totalorder (!%p291_p9), %s3625_s13, 1  ;;  %vm3544_vm0 = vmmov (!%p291_p9), 0  }
   0xe   : > { %294 = sbr.rel (%p291_p9) target bundleno = 1349 (0x545), region = 56  ;;  %3163 = vmatprep.subr.bf16.mxu0 (!%p291_p9), %v3543_v3  ;;  %v3164_v4 = vpack.c.bf16 (!%p291_p9), %v356_v1, %v355_v0  ;;  %v358_v5 = vld [vmem:[%s4779_s1 + $0x18] sm:$0xff] (!%p291_p9)  ;;  %v3545_v6 = vmov (!%p291_p9), 0.0   ;;  %v359_v8 = vld [vmem:[%s4779_s1 + $0x20] sm:$0xf] (!%p291_p9)  ;;  %vm443_vm1 = vcmask (!%p291_p9), 1043456  }
   0xf   : > { %2968 = vmatprep.mubr.msk.f32.mxu0 (!%p291_p9), %vm3544_vm0, %v3545_v6  ;;  %v3167_v7 = vpack.c.bf16 (!%p291_p9), %v358_v5, %v357_v2  ;;  %vm367_vm2 = vcmask (!%p291_p9), 293888   ;;  %v3781_v34 = vld [vmem:[%s4780_s2] ss:$0 sm:$0xff] (!%p291_p9)  ;;  %vm662_vm3 = vcmask (!%p291_p9), 162816   ;;  %s4788_s26 = smov (!%p291_p9), 20   ;;  %s4790_s23 = smov (!%p291_p9), 40  }
  0x10   : > { %3165 = vmatpush3.bf16.msra.mxu0 (!%p291_p9), %v3164_v4  ;;  %vm3548_vm4 = vmmov (!%p291_p9), 1   ;;  %vm687_vm6 = vcmask (!%p291_p9), 158720   ;;  %vm1259_vm7 = vcmask (!%p291_p9), 326656   ;;  %vm1283_vm8 = vcmask (!%p291_p9), 490496   ;;  %s3550_s24 = smov (!%p291_p9), 100   ;;  %s3551_s25 = smov (!%p291_p9), 22  }
  0x11   : > { %3166 = vmatprep.subr.bf16.mxu0 (!%p291_p9), %v3543_v3  ;;  %vm3856_vm5 = vmpackc.low (!%p291_p9), %vm443_vm1, %vm3548_vm4  ;;  %vm2025_vm9 = vcmask (!%p291_p9), 408576   ;;  %vm2106_vm10 = vcmask (!%p291_p9), 405504   ;;  %s4796_s28 = smov (!%p291_p9), 40   ;;  %vm2125_vm11 = vcmask (!%p291_p9), 818176   ;;  %vm2127_vm12 = vcmask (!%p291_p9), 179200   ;;  %s323_s27 = sand.u32 (!%p291_p9), 1, %s3533_s10  }
  0x12   : > { %vm1306_vm14 = vcmask (!%p291_p9), 483328   ;;  %vm2285_vm15 = vcmask (!%p291_p9), 588800   ;;  %s324_s16 = scalar_lea.vmem (!%p291_p9), [#allocation7], %s323_s27  ;;  %s2647_s22 = scalar_lea.sflag (!%p291_p9), [#allocation8], %s323_s27 }
  0x13   : > { %s2659_s17 = sshll.u32 (!%p291_p9), %s324_s16, 4  ;;  %s4738_s17 = int_to_ptr.vmem [resolvable:$true] %s2659_s17 }
  0x14   : > { %3168 = vmatpush3.bf16.msra.mxu0 (!%p291_p9), %v3167_v7 }
  0x15   : > { %s326_s29 = scalar_select %p325_p10, %s3625_s13, 1  ;;  %2966 = vmatprep.subr.mxu0 %v3545_v6 }
  0x17   : > { %s3428_s14 = smul.u32 200, %s326_s29  ;;  %s3549_s29 = smov 50  }
  0x18   : > { %2967 = vmatpush3.msk.msra.mxu0 %vm443_vm1, %v359_v8 }
  0x19   : > { %s3673_s21 = scalar_lea.vmem %s4778_s0, %s3428_s14  ;;  %s2818_s14 = sshll.u32 %s3625_s13, 4 }
  0x1a   : > { %v330_v9 = vld [vmem:[%s3673_s21] sm:$0xff]  ;;  %v331_v10 = vld [vmem:[%s3673_s21 + $0x8] sm:$0xff]  ;;  %v332_v11 = vld [vmem:[%s3673_s21 + $0x10] sm:$0xff]  ;;  %s3553_s13 = smov [#allocation7]  }
  0x1b   : > { %2969 = vmatmul.mubr.msk.f32.vlgmr.msra.gmra.mrb[0].mxu0 %vm367_vm2, %v330_v9  ;;  %v333_v12 = vld [vmem:[%s3673_s21 + $0x18] sm:$0xff]  ;;  %v334_v13 = vld [vmem:[%s3673_s21 + $0x20] sm:$0xff]  ;;  %v335_v14 = vld [vmem:[%s3673_s21 + $0x28] sm:$0xff] }
  0x1c   : > { %2971 = vmatprep.mubr.msk.f32.mxu0 %vm3544_vm0, %v3545_v6  ;;  %v336_v15 = vld [vmem:[%s3673_s21 + $0x30] sm:$0xff]  ;;  %v337_v16 = vld [vmem:[%s3673_s21 + $0x38] sm:$0xff]  ;;  %v338_v17 = vld [vmem:[%s3673_s21 + $0x40] sm:$0xff] }
  0x1d   : > { %v339_v18 = vld [vmem:[%s3673_s21 + $0x48] sm:$0xff]  ;;  %v340_v19 = vld [vmem:[%s3673_s21 + $0x50] sm:$0xff]  ;;  %v341_v20 = vld [vmem:[%s3673_s21 + $0x58] sm:$0xff] }
  0x1e   : > { %v342_v21 = vld [vmem:[%s3673_s21 + $0x60] sm:$0xff]  ;;  %v343_v22 = vld [vmem:[%s3673_s21 + $0x68] sm:$0xff]  ;;  %v344_v23 = vld [vmem:[%s3673_s21 + $0x70] sm:$0xff] }
  0x1f   : > { %2972 = vmatmul.mubr.msk.f32.gmra.mrb[2].mxu0 %vm367_vm2, %v331_v10  ;;  %v345_v24 = vld [vmem:[%s3673_s21 + $0x78] sm:$0xff]  ;;  %v346_v25 = vld [vmem:[%s3673_s21 + $0x80] sm:$0xff]  ;;  %v347_v26 = vld [vmem:[%s3673_s21 + $0x88] sm:$0xff] }
  0x20   : > { %2974 = vmatprep.mubr.msk.f32.mxu0 %vm3544_vm0, %v3545_v6  ;;  %v348_v27 = vld [vmem:[%s3673_s21 + $0x90] sm:$0xff]  ;;  %v349_v28 = vld [vmem:[%s3673_s21 + $0x98] sm:$0xff]  ;;  %v350_v29 = vld [vmem:[%s3673_s21 + $0xa0] sm:$0xff] }
  0x21   : > { %v351_v30 = vld [vmem:[%s3673_s21 + $0xa8] sm:$0xff]  ;;  %v352_v31 = vld [vmem:[%s3673_s21 + $0xb0] sm:$0xff]  ;;  %v353_v32 = vld [vmem:[%s3673_s21 + $0xb8] sm:$0xff] }
  0x22   : > { %v354_v33 = vld [vmem:[%s3673_s21 + $0xc0] sm:$0xf] }
  0x23   : > { %2975 = vmatmul.mubr.msk.f32.gmra.mrb[4].mxu0 %vm367_vm2, %v332_v11 }
  0x24   : > { %2977 = vmatprep.mubr.msk.f32.mxu0 %vm3544_vm0, %v3545_v6 }
  0x27   : > { %2978 = vmatmul.mubr.msk.f32.gmra.mrb[6].mxu0 %vm367_vm2, %v333_v12 }
  0x28   : > { %2980 = vmatprep.mubr.msk.f32.mxu0 %vm3544_vm0, %v3545_v6 }
  0x2b   : > { %2981 = vmatmul.mubr.msk.f32.gmra.mrb[8].mxu0 %vm367_vm2, %v334_v13 }
  0x2c   : > { %2983 = vmatprep.mubr.msk.f32.mxu0 %vm3544_vm0, %v3545_v6 }
  0x2f   : > { %2984 = vmatmul.mubr.msk.f32.gmra.mrb[10].mxu0 %vm367_vm2, %v335_v14 }
  0x30   : > { %2986 = vmatprep.mubr.msk.f32.mxu0 %vm3544_vm0, %v3545_v6 }
  0x33   : > { %2987 = vmatmul.mubr.msk.f32.gmra.mrb[12].mxu0 %vm367_vm2, %v336_v15 }
  0x34   : > { %2989 = vmatprep.mubr.msk.f32.mxu0 %vm3544_vm0, %v3545_v6 }
  0x37   : > { %2990 = vmatmul.mubr.msk.f32.gmra.mrb[14].mxu0 %vm367_vm2, %v337_v16 }
  0x38   : > { %2992 = vmatprep.mubr.msk.f32.mxu0 %vm3544_vm0, %v3545_v6 }
  0x3b   : > { %2993 = vmatmul.mubr.msk.f32.gmra.mrb[16].mxu0 %vm367_vm2, %v338_v17 }
  0x3c   : > { %2995 = vmatprep.mubr.msk.f32.mxu0 %vm3544_vm0, %v3545_v6 }
  0x3f   : > { %2996 = vmatmul.mubr.msk.f32.gmra.mrb[18].mxu0 %vm367_vm2, %v339_v18 }
  0x40   : > { %2998 = vmatprep.mubr.msk.f32.mxu0 %vm3544_vm0, %v3545_v6 }
  0x43   : > { %2999 = vmatmul.mubr.msk.f32.gmra.mrb[20].mxu0 %vm367_vm2, %v340_v19 }
  0x44   : > { %3001 = vmatprep.mubr.msk.f32.mxu0 %vm3544_vm0, %v3545_v6 }
  0x47   : > { %3002 = vmatmul.mubr.msk.f32.gmra.mrb[22].mxu0 %vm367_vm2, %v341_v20 }
  0x48   : > { %3004 = vmatprep.mubr.msk.f32.mxu0 %vm3544_vm0, %v3545_v6 }
  0x4b   : > { %3005 = vmatmul.mubr.msk.f32.gmra.mrb[24].mxu0 %vm367_vm2, %v342_v21 }
  0x4c   : > { %3007 = vmatprep.mubr.msk.f32.mxu0 %vm3544_vm0, %v3545_v6 }
  0x4f   : > { %3008 = vmatmul.mubr.msk.f32.gmra.mrb[26].mxu0 %vm367_vm2, %v343_v22 }
  0x50   : > { %3010 = vmatprep.mubr.msk.f32.mxu0 %vm3544_vm0, %v3545_v6 }
  0x53   : > { %3011 = vmatmul.mubr.msk.f32.gmra.mrb[28].mxu0 %vm367_vm2, %v344_v23 }
  0x54   : > { %3013 = vmatprep.mubr.msk.f32.mxu0 %vm3544_vm0, %v3545_v6 }
  0x57   : > { %3014 = vmatmul.mubr.msk.f32.gmra.mrb[30].mxu0 %vm367_vm2, %v345_v24 }
  0x58   : > { %3016 = vmatprep.mubr.msk.f32.mxu0 %vm3544_vm0, %v3545_v6 }
  0x5b   : > { %3017 = vmatmul.mubr.msk.f32.gmra.mrb[32].mxu0 %vm367_vm2, %v346_v25 }
  0x5c   : > { %3019 = vmatprep.mubr.msk.f32.mxu0 %vm3544_vm0, %v3545_v6 }
  0x5f   : > { %3020 = vmatmul.mubr.msk.f32.gmra.mrb[34].mxu0 %vm367_vm2, %v347_v26  ;;  %v2746_v26 = vld [vmem:[%s4781_s3 + $0x40] sm:$0xff] }
  0x60   : > { %3022 = vmatprep.mubr.msk.f32.mxu0 %vm3544_vm0, %v3545_v6 }
  0x63   : > { %3023 = vmatmul.mubr.msk.f32.gmra.mrb[36].mxu0 %vm367_vm2, %v348_v27 }
  0x64   : > { %3025 = vmatprep.mubr.msk.f32.mxu0 %vm3544_vm0, %v3545_v6 }
  0x67   : > { %3026 = vmatmul.mubr.msk.f32.gmra.mrb[38].mxu0 %vm367_vm2, %v349_v28 }
  0x68   : > { %3028 = vmatprep.mubr.msk.f32.mxu0 %vm3544_vm0, %v3545_v6 }
  0x6b   : > { %3029 = vmatmul.mubr.msk.f32.gmra.mrb[40].mxu0 %vm367_vm2, %v350_v29  ;;  %v2747_v29 = vld [vmem:[%s4781_s3 + $0x48] sm:$0xff] }
  0x6c   : > { %3031 = vmatprep.mubr.msk.f32.mxu0 %vm3544_vm0, %v3545_v6 }
  0x6f   : > { %3032 = vmatmul.mubr.msk.f32.gmra.mrb[42].mxu0 %vm367_vm2, %v351_v30 }
  0x70   : > { %3034 = vmatprep.mubr.msk.f32.mxu0 %vm3544_vm0, %v3545_v6 }
  0x73   : > { %3035 = vmatmul.mubr.msk.f32.gmra.mrb[44].mxu0 %vm367_vm2, %v352_v31 }
  0x74   : > { %3037 = vmatprep.mubr.msk.f32.mxu0 %vm3544_vm0, %v3545_v6 }
  0x77   : > { %3038 = vmatmul.mubr.msk.f32.gmra.mrb[46].mxu0 %vm367_vm2, %v353_v32 }
  0x78   : > { %3040 = vmatprep.mubr.msk.f32.mxu0 %vm3544_vm0, %v3545_v6  ;;  %vm2498_vm0 = vcmask 949248  }
  0x7b   : > { %3041 = vmatmul.mubr.msk.f32.gmra.mrb[48].mxu0 %vm367_vm2, %v354_v33 }
  0xee   : > { %v513_v35 = vpop.f32.mrb[0].mxu0 }
  0xef   : > { %v514_v36 = vadd.f32 %v3781_v34, %v513_v35  ;;  %v2970_v37 = vpop.f32.mrb[1].mxu0 }
  0xf1   : > { %v637_v38 = vmax.f32 %v514_v36, 0.0  ;;  %v3169_v36 = vpack.c.bf16 %v2747_v29, %v2746_v26 }
  0xf2   : > { %v518_v39 = vpop.f32.mrb[2].mxu0 }
  0xf3   : > { %663 = vst.msk [vmem:[#allocation2] sm:$0xff] %vm662_vm3, %v637_v38  ;;  %v519_v40 = vadd.f32 %v3781_v34, %v518_v39  ;;  %v2973_v41 = vpop.f32.mrb[3].mxu0  ;;  %3170 = vmatprep.subr.bf16.mxu1 %v3169_v36 }
  0xf4   : > { %3172 = vmatpush3.bf16.msra.mxu1 %v3169_v36 }
  0xf5   : > { %v638_v42 = vmax.f32 %v519_v40, 0.0 }
  0xf6   : > { %v523_v43 = vpop.f32.mrb[4].mxu0 }
  0xf7   : > { %664 = vst.msk [vmem:[#allocation2 + $0x8] sm:$0xff] %vm662_vm3, %v638_v42  ;;  %v524_v44 = vadd.f32 %v3781_v34, %v523_v43  ;;  %v2976_v45 = vpop.f32.mrb[5].mxu0 }
  0xf9   : > { %v639_v46 = vmax.f32 %v524_v44, 0.0  ;;  %v2748_v44 = vld [vmem:[%s4781_s3 + $0x50] sm:$0xff] }
  0xfa   : > { %v528_v47 = vpop.f32.mrb[6].mxu0 }
  0xfb   : > { %665 = vst.msk [vmem:[#allocation2 + $0x10] sm:$0xff] %vm662_vm3, %v639_v46  ;;  %v529_v48 = vadd.f32 %v3781_v34, %v528_v47  ;;  %v2979_v49 = vpop.f32.mrb[7].mxu0 }
  0xfc   : > { %v2749_v49 = vld [vmem:[%s4781_s3 + $0x58] sm:$0xff] }
  0xfd   : > { %v640_v50 = vmax.f32 %v529_v48, 0.0 }
  0xfe   : > { %v533_v51 = vpop.f32.mrb[8].mxu0  ;;  %v850_v58 = vld [vmem:[#allocation2 + $0x2] sm:$0xff] }
  0xff   : > { %666 = vst.msk [vmem:[#allocation2 + $0x18] sm:$0xff] %vm662_vm3, %v640_v50  ;;  %v534_v52 = vadd.f32 %v3781_v34, %v533_v51  ;;  %v2982_v53 = vpop.f32.mrb[9].mxu0  ;;  %v873_v59 = vld [vmem:[#allocation2 + $0x3] sm:$0xff] }
 0x100   : > { %v896_v4 = vmax.f32 %v850_v58, %v873_v59 }
 0x101   : > { %v641_v54 = vmax.f32 %v534_v52, 0.0 }
 0x102   : > { %v538_v55 = vpop.f32.mrb[10].mxu0  ;;  %v691_v62 = vld [vmem:[#allocation2 + $0x10] sm:$0xff] }
 0x103   : > { %667 = vst.msk [vmem:[#allocation2 + $0x20] sm:$0xff] %vm662_vm3, %v641_v54  ;;  %v539_v56 = vadd.f32 %v3781_v34, %v538_v55  ;;  %v2985_v57 = vpop.f32.mrb[11].mxu0  ;;  %v851_v5 = vld [vmem:[#allocation2 + $0xa] sm:$0xff]  ;;  %v3173_v54 = vpack.c.bf16 %v2749_v49, %v2748_v44 }
 0x104   : > { %v874_v7 = vld [vmem:[#allocation2 + $0xb] sm:$0xff] }
 0x105   : > { %v642_v60 = vmax.f32 %v539_v56, 0.0  ;;  %v897_v16 = vmax.f32 %v851_v5, %v874_v7  ;;  %3174 = vmatprep.subr.bf16.mxu1 %v3173_v54 }
 0x106   : > { %v543_v61 = vpop.f32.mrb[12].mxu0  ;;  %v714_v63 = vld [vmem:[#allocation2 + $0x11] sm:$0xff]  ;;  %3176 = vmatpush3.bf16.msra.mxu1 %v3173_v54 }
 0x107   : > { %668 = vst.msk [vmem:[#allocation2 + $0x28] sm:$0xff] %vm662_vm3, %v642_v60  ;;  %v544_v0 = vadd.f32 %v3781_v34, %v543_v61  ;;  %v2988_v1 = vpop.f32.mrb[13].mxu0  ;;  %v3796_v2 = vmax.f32 %v691_v62, %v714_v63  ;;  %v692_v11 = vld [vmem:[#allocation2 + $0x18] sm:$0xff]  ;;  %v2750_v61 = vld [vmem:[%s4781_s3 + $0x60] sm:$0xff] }
 0x109   : > { %v643_v8 = vmax.f32 %v544_v0, 0.0  ;;  %v928_v9 = vmax.f32 %v896_v4, %v3796_v2  ;;  %v2751_v4 = vld [vmem:[%s4781_s3 + $0x68] sm:$0xff] }
 0x10a   : > { %v548_v10 = vpop.f32.mrb[14].mxu0  ;;  %v715_v12 = vld [vmem:[#allocation2 + $0x19] sm:$0xff] }
 0x10b   : > { %669 = vst.msk [vmem:[#allocation2 + $0x30] sm:$0xff] %vm662_vm3, %v643_v8  ;;  %v549_v13 = vadd.f32 %v3781_v34, %v548_v10  ;;  %1075 = vrot.lane.b32.xlu0 %v928_v9, %s4788_s26  ;;  %v2991_v14 = vpop.f32.mrb[15].mxu0  ;;  %v3802_v15 = vmax.f32 %v692_v11, %v715_v12  ;;  %v954_v22 = vld [vmem:[#allocation2 + $0x1c] sm:$0xff]  ;;  %v3177_v10 = vpack.c.bf16 %v2751_v4, %v2750_v61 }
 0x10c   : > { %v977_v23 = vld [vmem:[#allocation2 + $0x1d] sm:$0xff] }
 0x10d   : > { %v644_v17 = vmax.f32 %v549_v13, 0.0  ;;  %v929_v18 = vmax.f32 %v897_v16, %v3802_v15  ;;  %v853_v24 = vld [vmem:[#allocation2 + $0x1a] sm:$0xff]  ;;  %v1000_v33 = vmax.f32 %v954_v22, %v977_v23  ;;  %3178 = vmatprep.subr.bf16.mxu1 %v3177_v10 }
 0x10e   : > { %v553_v19 = vpop.f32.mrb[16].mxu0  ;;  %v876_v25 = vld [vmem:[#allocation2 + $0x1b] sm:$0xff]  ;;  %v694_v28 = vld [vmem:[#allocation2 + $0x28] sm:$0xff]  ;;  %3180 = vmatpush3.bf16.msra.mxu1 %v3177_v10 }
 0x10f   : > { %670 = vst.msk [vmem:[#allocation2 + $0x38] sm:$0xff] %vm662_vm3, %v644_v17  ;;  %v554_v20 = vadd.f32 %v3781_v34, %v553_v19  ;;  %1077 = vrot.lane.b32.xlu1 %v929_v18, %s4788_s26  ;;  %v2994_v21 = vpop.f32.mrb[17].mxu0  ;;  %v3820_v41 = vmax.f32 %v853_v24, %v876_v25  ;;  %v854_v42 = vld [vmem:[#allocation2 + $0x22] sm:$0xff]  ;;  %v2752_v18 = vld [vmem:[%s4781_s3 + $0x70] sm:$0xff]  ;;  %v2753_v25 = vld [vmem:[%s4781_s3 + $0x78] sm:$0xf] }
 0x110   : > { %v877_v43 = vld [vmem:[#allocation2 + $0x23] sm:$0xff] }
 0x111   : > { %v645_v27 = vmax.f32 %v554_v20, 0.0  ;;  %v3837_v58 = vmax.f32 %v854_v42, %v877_v43  ;;  %v955_v59 = vld [vmem:[#allocation2 + $0x24] sm:$0xff] }
 0x112   : > { %v558_v30 = vpop.f32.mrb[18].mxu0  ;;  %v855_v31 = vld [vmem:[#allocation2 + $0x2a] sm:$0xff] }
 0x113   : > { %v878_v32 = vld [vmem:[#allocation2 + $0x2b] sm:$0xff]  ;;  %671 = vst.msk [vmem:[#allocation2 + $0x40] sm:$0xff] %vm662_vm3, %v645_v27  ;;  %v559_v37 = vadd.f32 %v3781_v34, %v558_v30  ;;  %v2997_v38 = vpop.f32.mrb[19].mxu0  ;;  %v3181_v30 = vpack.c.bf16 %v2753_v25, %v2752_v18 }
 0x114   : > { %v717_v35 = vld [vmem:[#allocation2 + $0x29] sm:$0xff]  ;;  %v3816_v39 = vmax.f32 %v855_v31, %v878_v32 }
 0x115   : > { %v3818_v40 = vmax.f32 %v694_v28, %v717_v35  ;;  %v646_v45 = vmax.f32 %v559_v37, 0.0  ;;  %v695_v48 = vld [vmem:[#allocation2 + $0x30] sm:$0xff]  ;;  %v978_v60 = vld [vmem:[#allocation2 + $0x25] sm:$0xff]  ;;  %3183 = vmatprep.subr.msk.bf16.mxu1 %vm3856_vm5, %v3181_v30 }
 0x116   : > { %v1032_v46 = vmax.f32 %v1000_v33, %v3816_v39  ;;  %v563_v50 = vpop.f32.mrb[20].mxu0  ;;  %v718_v51 = vld [vmem:[#allocation2 + $0x31] sm:$0xff]  ;;  %v1001_v13 = vmax.f32 %v955_v59, %v978_v60  ;;  %3186 = vmatpush3.bf16.msk.msra.mxu1 %vm3856_vm5, %v3181_v30 }
 0x117   : > { %v931_v47 = vmax.f32 %v3820_v41, %v3818_v40  ;;  %v856_v52 = vld [vmem:[#allocation2 + $0x32] sm:$0xff]  ;;  %672 = vst.msk [vmem:[#allocation2 + $0x48] sm:$0xff] %vm662_vm3, %v646_v45  ;;  %v564_v55 = vadd.f32 %v3781_v34, %v563_v50  ;;  %v3000_v56 = vpop.f32.mrb[21].mxu0  ;;  %v3835_v57 = vmax.f32 %v695_v48, %v718_v51 }
 0x118   : > { %v879_v53 = vld [vmem:[#allocation2 + $0x33] sm:$0xff]  ;;  %1173 = vrot.lane.b32.xlu1 %v1032_v46, %s4790_s23 }
 0x119   : > { %1081 = vrot.lane.b32.xlu0 %v931_v47, %s4788_s26  ;;  %v647_v62 = vmax.f32 %v564_v55, 0.0  ;;  %v932_v63 = vmax.f32 %v3837_v58, %v3835_v57  ;;  %v902_v0 = vmax.f32 %v856_v52, %v879_v53  ;;  %v696_v1 = vld [vmem:[#allocation2 + $0x38] sm:$0xff]  ;;  %v956_v16 = vld [vmem:[#allocation2 + $0x2c] sm:$0xff] }
 0x11a   : > { %v568_v5 = vpop.f32.mrb[22].mxu0  ;;  %v719_v7 = vld [vmem:[#allocation2 + $0x39] sm:$0xff]  ;;  %v979_v17 = vld [vmem:[#allocation2 + $0x2d] sm:$0xff] }
 0x11b   : > { %v857_v8 = vld [vmem:[#allocation2 + $0x3a] sm:$0xff]  ;;  %673 = vst.msk [vmem:[#allocation2 + $0x50] sm:$0xff] %vm662_vm3, %v647_v62  ;;  %v569_v11 = vadd.f32 %v3781_v34, %v568_v5  ;;  %v3003_v12 = vpop.f32.mrb[23].mxu0  ;;  %v3850_v14 = vmax.f32 %v696_v1, %v719_v7  ;;  %v1033_v21 = vmax.f32 %v1001_v13, %v902_v0  ;;  %v1002_v33 = vmax.f32 %v956_v16, %v979_v17 }
 0x11c   : > { %v880_v9 = vld [vmem:[#allocation2 + $0x3b] sm:$0xff] }
 0x11d   : > { %1083 = vrot.lane.b32.xlu0 %v932_v63, %s4788_s26  ;;  %v648_v20 = vmax.f32 %v569_v11, 0.0  ;;  %v933_v22 = vmax.f32 %v3816_v39, %v3850_v14  ;;  %v903_v23 = vmax.f32 %v857_v8, %v880_v9  ;;  %v697_v24 = vld [vmem:[#allocation2 + $0x40] sm:$0xff]  ;;  %v957_v36 = vld [vmem:[#allocation2 + $0x34] sm:$0xff] }
 0x11e   : > { %v573_v26 = vpop.f32.mrb[24].mxu0  ;;  %v720_v27 = vld [vmem:[#allocation2 + $0x41] sm:$0xff]  ;;  %v980_v37 = vld [vmem:[#allocation2 + $0x35] sm:$0xff] }
 0x11f   : > { %v858_v28 = vld [vmem:[#allocation2 + $0x42] sm:$0xff]  ;;  %674 = vst.msk [vmem:[#allocation2 + $0x58] sm:$0xff] %vm662_vm3, %v648_v20  ;;  %v574_v31 = vadd.f32 %v3781_v34, %v573_v26  ;;  %1085 = vrot.lane.b32.xlu1 %v933_v22, %s4788_s26  ;;  %v3006_v32 = vpop.f32.mrb[25].mxu0  ;;  %v3869_v35 = vmax.f32 %v697_v24, %v720_v27  ;;  %v1034_v39 = vmax.f32 %v1002_v33, %v903_v23 }
 0x120   : > { %v881_v29 = vld [vmem:[#allocation2 + $0x43] sm:$0xff]  ;;  %v1003_v51 = vmax.f32 %v957_v36, %v980_v37 }
 0x121   : > { %1175 = vrot.lane.b32.xlu0 %v1033_v21, %s4790_s23  ;;  %v649_v38 = vmax.f32 %v574_v31, 0.0  ;;  %v934_v42 = vmax.f32 %v902_v0, %v3869_v35  ;;  %v904_v43 = vmax.f32 %v858_v28, %v881_v29  ;;  %v698_v44 = vld [vmem:[#allocation2 + $0x48] sm:$0xff]  ;;  %v958_v53 = vld [vmem:[#allocation2 + $0x3c] sm:$0xff] }
 0x122   : > { %v578_v45 = vpop.f32.mrb[26].mxu0  ;;  %v721_v46 = vld [vmem:[#allocation2 + $0x49] sm:$0xff]  ;;  %v981_v54 = vld [vmem:[#allocation2 + $0x3d] sm:$0xff] }
 0x123   : > { %v859_v47 = vld [vmem:[#allocation2 + $0x4a] sm:$0xff]  ;;  %675 = vst.msk [vmem:[#allocation2 + $0x60] sm:$0xff] %vm662_vm3, %v649_v38  ;;  %v579_v49 = vadd.f32 %v3781_v34, %v578_v45  ;;  %1177 = vrot.lane.b32.xlu1 %v1034_v39, %s4790_s23  ;;  %v3009_v50 = vpop.f32.mrb[27].mxu0  ;;  %v3880_v52 = vmax.f32 %v698_v44, %v721_v46  ;;  %v1035_v56 = vmax.f32 %v1003_v51, %v904_v43 }
 0x124   : > { %v882_v48 = vld [vmem:[#allocation2 + $0x4b] sm:$0xff]  ;;  %v1004_v7 = vmax.f32 %v958_v53, %v981_v54 }
 0x125   : > { %1087 = vrot.lane.b32.xlu0 %v934_v42, %s4788_s26  ;;  %v650_v55 = vmax.f32 %v579_v49, 0.0  ;;  %v935_v59 = vmax.f32 %v903_v23, %v3880_v52  ;;  %v905_v60 = vmax.f32 %v859_v47, %v882_v48  ;;  %v699_v61 = vld [vmem:[#allocation2 + $0x50] sm:$0xff]  ;;  %v959_v9 = vld [vmem:[#allocation2 + $0x44] sm:$0xff] }
 0x126   : > { %v583_v62 = vpop.f32.mrb[28].mxu0  ;;  %v722_v63 = vld [vmem:[#allocation2 + $0x51] sm:$0xff]  ;;  %v982_v10 = vld [vmem:[#allocation2 + $0x45] sm:$0xff] }
 0x127   : > { %v860_v0 = vld [vmem:[#allocation2 + $0x52] sm:$0xff]  ;;  %676 = vst.msk [vmem:[#allocation2 + $0x68] sm:$0xff] %vm662_vm3, %v650_v55  ;;  %v584_v4 = vadd.f32 %v3781_v34, %v583_v62  ;;  %1089 = vrot.lane.b32.xlu1 %v935_v59, %s4788_s26  ;;  %v3012_v5 = vpop.f32.mrb[29].mxu0  ;;  %v3887_v8 = vmax.f32 %v699_v61, %v722_v63  ;;  %v1036_v12 = vmax.f32 %v1004_v7, %v905_v60 }
 0x128   : > { %v883_v1 = vld [vmem:[#allocation2 + $0x53] sm:$0xff]  ;;  %v1005_v25 = vmax.f32 %v959_v9, %v982_v10 }
 0x129   : > { %1179 = vrot.lane.b32.xlu0 %v1035_v56, %s4790_s23  ;;  %v651_v11 = vmax.f32 %v584_v4, 0.0  ;;  %v936_v13 = vmax.f32 %v904_v43, %v3887_v8  ;;  %v906_v16 = vmax.f32 %v860_v0, %v883_v1  ;;  %v700_v17 = vld [vmem:[#allocation2 + $0x58] sm:$0xff]  ;;  %v960_v27 = vld [vmem:[#allocation2 + $0x4c] sm:$0xff] }
 0x12a   : > { %v588_v18 = vpop.f32.mrb[30].mxu0  ;;  %v723_v20 = vld [vmem:[#allocation2 + $0x59] sm:$0xff]  ;;  %v983_v28 = vld [vmem:[#allocation2 + $0x4d] sm:$0xff] }
 0x12b   : > { %v861_v21 = vld [vmem:[#allocation2 + $0x5a] sm:$0xff]  ;;  %677 = vst.msk [vmem:[#allocation2 + $0x70] sm:$0xff] %vm662_vm3, %v651_v11  ;;  %v589_v23 = vadd.f32 %v3781_v34, %v588_v18  ;;  %1181 = vrot.lane.b32.xlu1 %v1036_v12, %s4790_s23  ;;  %v3015_v24 = vpop.f32.mrb[31].mxu0  ;;  %v3894_v26 = vmax.f32 %v700_v17, %v723_v20  ;;  %v1037_v30 = vmax.f32 %v1005_v25, %v906_v16 }
 0x12c   : > { %v884_v22 = vld [vmem:[#allocation2 + $0x5b] sm:$0xff]  ;;  %v1006_v44 = vmax.f32 %v960_v27, %v983_v28 }
 0x12d   : > { %1091 = vrot.lane.b32.xlu0 %v936_v13, %s4788_s26  ;;  %v652_v29 = vmax.f32 %v589_v23, 0.0  ;;  %v937_v31 = vmax.f32 %v905_v60, %v3894_v26  ;;  %v907_v32 = vmax.f32 %v861_v21, %v884_v22  ;;  %v701_v33 = vld [vmem:[#allocation2 + $0x60] sm:$0xff]  ;;  %v961_v46 = vld [vmem:[#allocation2 + $0x54] sm:$0xff] }
 0x12e   : > { %v593_v36 = vpop.f32.mrb[32].mxu0  ;;  %v724_v37 = vld [vmem:[#allocation2 + $0x61] sm:$0xff]  ;;  %v984_v47 = vld [vmem:[#allocation2 + $0x55] sm:$0xff] }
 0x12f   : > { %v862_v38 = vld [vmem:[#allocation2 + $0x62] sm:$0xff]  ;;  %678 = vst.msk [vmem:[#allocation2 + $0x78] sm:$0xff] %vm662_vm3, %v652_v29  ;;  %v594_v42 = vadd.f32 %v3781_v34, %v593_v36  ;;  %1093 = vrot.lane.b32.xlu1 %v937_v31, %s4788_s26  ;;  %v3018_v43 = vpop.f32.mrb[33].mxu0  ;;  %v3901_v45 = vmax.f32 %v701_v33, %v724_v37  ;;  %v1038_v49 = vmax.f32 %v1006_v44, %v907_v32 }
 0x130   : > { %v885_v39 = vld [vmem:[#allocation2 + $0x63] sm:$0xff]  ;;  %v1007_v62 = vmax.f32 %v961_v46, %v984_v47 }
 0x131   : > { %1183 = vrot.lane.b32.xlu0 %v1037_v30, %s4790_s23  ;;  %v653_v48 = vmax.f32 %v594_v42, 0.0  ;;  %v938_v50 = vmax.f32 %v906_v16, %v3901_v45  ;;  %v908_v51 = vmax.f32 %v862_v38, %v885_v39  ;;  %v702_v53 = vld [vmem:[#allocation2 + $0x68] sm:$0xff]  ;;  %v962_v0 = vld [vmem:[#allocation2 + $0x5c] sm:$0xff] }
 0x132   : > { %v598_v54 = vpop.f32.mrb[34].mxu0  ;;  %v725_v55 = vld [vmem:[#allocation2 + $0x69] sm:$0xff]  ;;  %v985_v1 = vld [vmem:[#allocation2 + $0x5d] sm:$0xff] }
 0x133   : > { %v863_v56 = vld [vmem:[#allocation2 + $0x6a] sm:$0xff]  ;;  %679 = vst.msk [vmem:[#allocation2 + $0x80] sm:$0xff] %vm662_vm3, %v653_v48  ;;  %v599_v60 = vadd.f32 %v3781_v34, %v598_v54  ;;  %1185 = vrot.lane.b32.xlu1 %v1038_v49, %s4790_s23  ;;  %v3021_v61 = vpop.f32.mrb[35].mxu0  ;;  %v3908_v63 = vmax.f32 %v702_v53, %v725_v55  ;;  %v1039_v5 = vmax.f32 %v1007_v62, %v908_v51  ;;  %v1324_v24 = vld [vmem:[%s4781_s3] sm:$0xff] }
 0x134   : > { %v886_v59 = vld [vmem:[#allocation2 + $0x6b] sm:$0xff]  ;;  %v1008_v20 = vmax.f32 %v962_v0, %v985_v1 }
 0x135   : > { %1095 = vrot.lane.b32.xlu0 %v938_v50, %s4788_s26  ;;  %v654_v4 = vmax.f32 %v599_v60, 0.0  ;;  %v939_v7 = vmax.f32 %v907_v32, %v3908_v63  ;;  %v909_v9 = vmax.f32 %v863_v56, %v886_v59  ;;  %v703_v10 = vld [vmem:[#allocation2 + $0x70] sm:$0xff]  ;;  %v963_v22 = vld [vmem:[#allocation2 + $0x64] sm:$0xff] }
 0x136   : > { %v603_v11 = vpop.f32.mrb[36].mxu0  ;;  %v726_v12 = vld [vmem:[#allocation2 + $0x71] sm:$0xff]  ;;  %v986_v23 = vld [vmem:[#allocation2 + $0x65] sm:$0xff] }
 0x137   : > { %v864_v13 = vld [vmem:[#allocation2 + $0x72] sm:$0xff]  ;;  %680 = vst.msk [vmem:[#allocation2 + $0x88] sm:$0xff] %vm662_vm3, %v654_v4  ;;  %v604_v17 = vadd.f32 %v3781_v34, %v603_v11  ;;  %1097 = vrot.lane.b32.xlu1 %v939_v7, %s4788_s26  ;;  %v3024_v18 = vpop.f32.mrb[37].mxu0  ;;  %v3915_v21 = vmax.f32 %v703_v10, %v726_v12  ;;  %v1040_v27 = vmax.f32 %v1008_v20, %v909_v9  ;;  %v1325_v31 = vld [vmem:[%s4781_s3 + $0x8] sm:$0xff] }
 0x138   : > { %v887_v16 = vld [vmem:[#allocation2 + $0x73] sm:$0xff]  ;;  %v3924_v38 = vpack.c.bf16 %v1325_v31, %v1324_v24  ;;  %v1009_v43 = vmax.f32 %v963_v22, %v986_v23 }
 0x139   : > { %1187 = vrot.lane.b32.xlu0 %v1039_v5, %s4790_s23  ;;  %v655_v25 = vmax.f32 %v604_v17, 0.0  ;;  %v940_v28 = vmax.f32 %v908_v51, %v3915_v21  ;;  %v910_v29 = vmax.f32 %v864_v13, %v887_v16  ;;  %v704_v30 = vld [vmem:[#allocation2 + $0x78] sm:$0xff]  ;;  %v964_v46 = vld [vmem:[#allocation2 + $0x6c] sm:$0xff] }
 0x13a   : > { %v608_v32 = vpop.f32.mrb[38].mxu0  ;;  %v727_v33 = vld [vmem:[#allocation2 + $0x79] sm:$0xff]  ;;  %v987_v47 = vld [vmem:[#allocation2 + $0x6d] sm:$0xff]  ;;  %3188 = vmatprep.subr.bf16.mxu1 %v3924_v38 }
 0x13b   : > { %v865_v36 = vld [vmem:[#allocation2 + $0x7a] sm:$0xff]  ;;  %681 = vst.msk [vmem:[#allocation2 + $0x90] sm:$0xff] %vm662_vm3, %v655_v25  ;;  %v609_v39 = vadd.f32 %v3781_v34, %v608_v32  ;;  %1189 = vrot.lane.b32.xlu1 %v1040_v27, %s4790_s23  ;;  %v3027_v42 = vpop.f32.mrb[39].mxu0  ;;  %v3930_v44 = vmax.f32 %v704_v30, %v727_v33  ;;  %v1041_v49 = vmax.f32 %v1009_v43, %v910_v29 }
 0x13c   : > { %v888_v37 = vld [vmem:[#allocation2 + $0x7b] sm:$0xff]  ;;  %v1010_v62 = vmax.f32 %v964_v46, %v987_v47 }
 0x13d   : > { %1099 = vrot.lane.b32.xlu0 %v940_v28, %s4788_s26  ;;  %v656_v48 = vmax.f32 %v609_v39, 0.0  ;;  %v941_v50 = vmax.f32 %v909_v9, %v3930_v44  ;;  %v911_v51 = vmax.f32 %v865_v36, %v888_v37  ;;  %v705_v53 = vld [vmem:[#allocation2 + $0x80] sm:$0xff]  ;;  %v965_v1 = vld [vmem:[#allocation2 + $0x74] sm:$0xff] }
 0x13e   : > { %v613_v54 = vpop.f32.mrb[40].mxu0  ;;  %v728_v55 = vld [vmem:[#allocation2 + $0x81] sm:$0xff]  ;;  %v988_v4 = vld [vmem:[#allocation2 + $0x75] sm:$0xff] }
 0x13f   : > { %v866_v56 = vld [vmem:[#allocation2 + $0x82] sm:$0xff]  ;;  %682 = vst.msk [vmem:[#allocation2 + $0x98] sm:$0xff] %vm662_vm3, %v656_v48  ;;  %v614_v60 = vadd.f32 %v3781_v34, %v613_v54  ;;  %1101 = vrot.lane.b32.xlu1 %v941_v50, %s4788_s26  ;;  %v3030_v61 = vpop.f32.mrb[41].mxu0  ;;  %v3938_v0 = vmax.f32 %v705_v53, %v728_v55  ;;  %v1042_v7 = vmax.f32 %v1010_v62, %v911_v51 }
 0x140   : > { %v889_v59 = vld [vmem:[#allocation2 + $0x83] sm:$0xff]  ;;  %v1011_v22 = vmax.f32 %v965_v1, %v988_v4 }
 0x141   : > { %1191 = vrot.lane.b32.xlu0 %v1041_v49, %s4790_s23  ;;  %v657_v5 = vmax.f32 %v614_v60, 0.0  ;;  %v942_v9 = vmax.f32 %v910_v29, %v3938_v0  ;;  %v912_v10 = vmax.f32 %v866_v56, %v889_v59  ;;  %v706_v11 = vld [vmem:[#allocation2 + $0x88] sm:$0xff]  ;;  %v966_v24 = vld [vmem:[#allocation2 + $0x7c] sm:$0xff] }
 0x142   : > { %v618_v12 = vpop.f32.mrb[42].mxu0  ;;  %v729_v13 = vld [vmem:[#allocation2 + $0x89] sm:$0xff]  ;;  %v989_v25 = vld [vmem:[#allocation2 + $0x7d] sm:$0xff] }
 0x143   : > { %v867_v16 = vld [vmem:[#allocation2 + $0x8a] sm:$0xff]  ;;  %683 = vst.msk [vmem:[#allocation2 + $0xa0] sm:$0xff] %vm662_vm3, %v657_v5  ;;  %v619_v18 = vadd.f32 %v3781_v34, %v618_v12  ;;  %1193 = vrot.lane.b32.xlu1 %v1042_v7, %s4790_s23  ;;  %v3033_v20 = vpop.f32.mrb[43].mxu0  ;;  %v3945_v23 = vmax.f32 %v706_v11, %v729_v13  ;;  %v1043_v28 = vmax.f32 %v1011_v22, %v912_v10 }
 0x144   : > { %v890_v17 = vld [vmem:[#allocation2 + $0x8b] sm:$0xff]  ;;  %v1012_v43 = vmax.f32 %v966_v24, %v989_v25 }
 0x145   : > { %1103 = vrot.lane.b32.xlu0 %v942_v9, %s4788_s26  ;;  %v658_v27 = vmax.f32 %v619_v18, 0.0  ;;  %v943_v29 = vmax.f32 %v911_v51, %v3945_v23  ;;  %v913_v30 = vmax.f32 %v867_v16, %v890_v17  ;;  %v707_v31 = vld [vmem:[#allocation2 + $0x90] sm:$0xff]  ;;  %v967_v47 = vld [vmem:[#allocation2 + $0x84] sm:$0xff] }
 0x146   : > { %v623_v32 = vpop.f32.mrb[44].mxu0  ;;  %v730_v33 = vld [vmem:[#allocation2 + $0x91] sm:$0xff]  ;;  %v990_v48 = vld [vmem:[#allocation2 + $0x85] sm:$0xff] }
 0x147   : > { %v868_v36 = vld [vmem:[#allocation2 + $0x92] sm:$0xff]  ;;  %684 = vst.msk [vmem:[#allocation2 + $0xa8] sm:$0xff] %vm662_vm3, %v658_v27  ;;  %v624_v39 = vadd.f32 %v3781_v34, %v623_v32  ;;  %1105 = vrot.lane.b32.xlu1 %v943_v29, %s4788_s26  ;;  %v3036_v42 = vpop.f32.mrb[45].mxu0  ;;  %v3952_v46 = vmax.f32 %v707_v31, %v730_v33  ;;  %v1044_v50 = vmax.f32 %v1012_v43, %v913_v30  ;;  %v951_v29 = vld [vmem:[#allocation2 + $0x4] sm:$0xff] }
 0x148   : > { %v891_v37 = vld [vmem:[#allocation2 + $0x93] sm:$0xff]  ;;  %v1013_v1 = vmax.f32 %v967_v47, %v990_v48 }
 0x149   : > { %1195 = vrot.lane.b32.xlu0 %v1043_v28, %s4790_s23  ;;  %v659_v49 = vmax.f32 %v624_v39, 0.0  ;;  %v944_v51 = vmax.f32 %v912_v10, %v3952_v46  ;;  %v914_v53 = vmax.f32 %v868_v36, %v891_v37  ;;  %v708_v54 = vld [vmem:[#allocation2 + $0x98] sm:$0xff]  ;;  %v968_v5 = vld [vmem:[#allocation2 + $0x8c] sm:$0xff] }
 0x14a   : > { %v628_v55 = vpop.f32.mrb[46].mxu0  ;;  %v731_v56 = vld [vmem:[#allocation2 + $0x99] sm:$0xff]  ;;  %v991_v7 = vld [vmem:[#allocation2 + $0x8d] sm:$0xff]  ;;  %v974_v36 = vld [vmem:[#allocation2 + $0x5] sm:$0xff] }
 0x14b   : > { %v869_v59 = vld [vmem:[#allocation2 + $0x9a] sm:$0xff]  ;;  %685 = vst.msk [vmem:[#allocation2 + $0xb0] sm:$0xff] %vm662_vm3, %v659_v49  ;;  %v629_v61 = vadd.f32 %v3781_v34, %v628_v55  ;;  %1197 = vrot.lane.b32.xlu1 %v1044_v50, %s4790_s23  ;;  %v3039_v62 = vpop.f32.mrb[47].mxu0  ;;  %v3959_v4 = vmax.f32 %v708_v54, %v731_v56  ;;  %v1045_v10 = vmax.f32 %v1013_v1, %v914_v53  ;;  %v852_v16 = vld [vmem:[#allocation2 + $0x12] sm:$0xff] }
 0x14c   : > { %v892_v60 = vld [vmem:[#allocation2 + $0x9b] sm:$0xff]  ;;  %v875_v17 = vld [vmem:[#allocation2 + $0x13] sm:$0xff]  ;;  %v1014_v27 = vmax.f32 %v968_v5, %v991_v7  ;;  %v997_v48 = vmax.f32 %v951_v29, %v974_v36 }
 0x14d   : > { %1107 = vrot.lane.b32.xlu0 %v944_v51, %s4788_s26  ;;  %v660_v9 = vmax.f32 %v629_v61, 0.0  ;;  %v945_v11 = vmax.f32 %v913_v30, %v3959_v4  ;;  %v915_v12 = vmax.f32 %v869_v59, %v892_v60  ;;  %v709_v13 = vld [vmem:[#allocation2 + $0xa0] sm:$0xff]  ;;  %v969_v31 = vld [vmem:[#allocation2 + $0x94] sm:$0xff]  ;;  %v898_v33 = vmax.f32 %v852_v16, %v875_v17  ;;  %v952_v49 = vld [vmem:[#allocation2 + $0xc] sm:$0xff] }
 0x14e   : > { %v633_v18 = vpop.f32.mrb[48].mxu0  ;;  %v732_v20 = vld [vmem:[#allocation2 + $0xa1] sm:$0xff]  ;;  %v992_v32 = vld [vmem:[#allocation2 + $0x95] sm:$0xff]  ;;  %v975_v50 = vld [vmem:[#allocation2 + $0xd] sm:$0xff] }
 0x14f   : > { %v870_v22 = vld [vmem:[#allocation2 + $0xa2] sm:$0xff]  ;;  %686 = vst.msk [vmem:[#allocation2 + $0xb8] sm:$0xff] %vm662_vm3, %v660_v9  ;;  %v634_v25 = vadd.f32 %v3781_v34, %v633_v18  ;;  %1109 = vrot.lane.b32.xlu1 %v945_v11, %s4788_s26  ;;  %v3966_v28 = vmax.f32 %v709_v13, %v732_v20  ;;  %v3042_v30 = vpop.f32.mrb[49].mxu0  ;;  %v1046_v39 = vmax.f32 %v1014_v27, %v915_v12  ;;  %v953_v61 = vld [vmem:[#allocation2 + $0x14] sm:$0xff] }
 0x150   : > { %v893_v24 = vld [vmem:[#allocation2 + $0xa3] sm:$0xff]  ;;  %v1015_v47 = vmax.f32 %v969_v31, %v992_v32  ;;  %v1029_v55 = vmax.f32 %v997_v48, %v898_v33  ;;  %v976_v62 = vld [vmem:[#allocation2 + $0x15] sm:$0xff] }
 0x151   : > { %1199 = vrot.lane.b32.xlu0 %v1045_v10, %s4790_s23  ;;  %v661_v37 = vmax.f32 %v634_v25, 0.0  ;;  %v946_v42 = vmax.f32 %v914_v53, %v3966_v28  ;;  %v916_v43 = vmax.f32 %v870_v22, %v893_v24  ;;  %v716_v34 = vld [vmem:[#allocation2 + $0x21] sm:$0xff]  ;;  %v998_v53 = vmax.f32 %v952_v49, %v975_v50  ;;  %v762_v27 = vld [vmem:[#allocation2 + $0x2e] sm:$0xff]  ;;  %v763_v36 = vld [vmem:[#allocation2 + $0x36] sm:$0xff] }
 0x152   : > { %v693_v51 = vld [vmem:[#allocation2 + $0x20] sm:$0xff]  ;;  %v919_v59 = vld [vmem:[#allocation2 + $0xb0] sm:$0xff]  ;;  %v710_v9 = vld [vmem:[#allocation2 + $0xa8] sm:$0xff]  ;;  %v999_v11 = vmax.f32 %v953_v61, %v976_v62 }
 0x153   : > { %688 = vst.msk [vmem:[#allocation2 + $0xc0] sm:$0xf] %vm687_vm6, %v661_v37  ;;  %1201 = vrot.lane.b32.xlu1 %v1046_v39, %s4790_s23  ;;  %v1047_v54 = vmax.f32 %v1015_v47, %v916_v43  ;;  %v739_v56 = vmax.f32 %v693_v51, %v716_v34  ;;  %v1030_v1 = vmax.f32 %v998_v53, %v3820_v41  ;;  %v733_v10 = vld [vmem:[#allocation2 + $0xa9] sm:$0xff]  ;;  %v786_v37 = vld [vmem:[#allocation2 + $0x37] sm:$0xff] }
 0x154   : > { %v1031_v13 = vmax.f32 %v999_v11, %v3837_v58  ;;  %v3977_v17 = vmax.f32 %v710_v9, %v733_v10  ;;  %v761_v18 = vld [vmem:[#allocation2 + $0x26] sm:$0xff]  ;;  %v785_v29 = vld [vmem:[#allocation2 + $0x2f] sm:$0xff]  ;;  %v764_v34 = vld [vmem:[#allocation2 + $0x3e] sm:$0xff] }
 0x155   : > { %1111 = vrot.lane.b32.xlu0 %v946_v42, %s4788_s26  ;;  %v930_v5 = vmax.f32 %v898_v33, %v739_v56  ;;  %v784_v20 = vld [vmem:[#allocation2 + $0x27] sm:$0xff]  ;;  %v808_v33 = vmax.f32 %v762_v27, %v785_v29 }
 0x156   : > { %v922_v60 = vld [vmem:[#allocation2 + $0xb1] sm:$0xff]  ;;  %v947_v41 = vmax.f32 %v915_v12, %v3977_v17  ;;  %v807_v22 = vmax.f32 %v761_v18, %v784_v20 }
 0x157   : > { %1203 = vrot.lane.b32.xlu1 %v1047_v54, %s4790_s23  ;;  %v925_v7 = vmax.f32 %v919_v59, %v922_v60  ;;  %v831_v42 = vmax.f32 %v739_v56, %v808_v33  ;;  %v788_v59 = vld [vmem:[#allocation2 + $0x47] sm:$0xff]  ;;  %v767_v20 = vld [vmem:[#allocation2 + $0x56] sm:$0xff] }
 0x158   : > { %v830_v58 = vmax.f32 %v3802_v15, %v807_v22  ;;  %v787_v15 = vld [vmem:[#allocation2 + $0x3f] sm:$0xff]  ;;  %v790_v22 = vld [vmem:[#allocation2 + $0x57] sm:$0xff] }
 0x159   : > { %1167 = vrot.lane.b32.xlu0 %v1029_v55, %s4790_s23  ;;  %v948_v16 = vmax.f32 %v916_v43, %v925_v7  ;;  %v809_v43 = vmax.f32 %v763_v36, %v786_v37  ;;  %v810_v54 = vmax.f32 %v764_v34, %v787_v15  ;;  %v765_v55 = vld [vmem:[#allocation2 + $0x46] sm:$0xff]  ;;  %v789_v7 = vld [vmem:[#allocation2 + $0x4f] sm:$0xff]  ;;  %v813_v36 = vmax.f32 %v767_v20, %v790_v22  ;;  %v768_v37 = vld [vmem:[#allocation2 + $0x5e] sm:$0xff] }
 0x15a   : > { %v794_v20 = vld [vmem:[#allocation2 + $0x77] sm:$0xff] }
 0x15b   : > { %1169 = vrot.lane.b32.xlu1 %v1030_v1, %s4790_s23  ;;  %v832_v51 = vmax.f32 %v3818_v40, %v809_v43  ;;  %v833_v62 = vmax.f32 %v3835_v57, %v810_v54  ;;  %v811_v1 = vmax.f32 %v765_v55, %v788_v59  ;;  %v792_v54 = vld [vmem:[#allocation2 + $0x67] sm:$0xff] }
 0x15d   : > { %1079 = vrot.lane.b32.xlu0 %v930_v5, %s4788_s26  ;;  %v766_v5 = vld [vmem:[#allocation2 + $0x4e] sm:$0xff]  ;;  %v834_v57 = vmax.f32 %v3850_v14, %v811_v1 }
 0x15e   : > { %v812_v18 = vmax.f32 %v766_v5, %v789_v7  ;;  %v1329_v14 = vld [vmem:[%s4781_s3 + $0x28] sm:$0xff] }
 0x15f   : > { %1171 = vrot.lane.b32.xlu1 %v1031_v13, %s4790_s23  ;;  %v770_v7 = vld [vmem:[#allocation2 + $0x6e] sm:$0xff] }
 0x160   : > { %v835_v33 = vmax.f32 %v3869_v35, %v812_v18  ;;  %v1330_v35 = vld [vmem:[%s4781_s3 + $0x30] sm:$0xff] }
 0x161   : > { %1115 = vrot.lane.b32.xlu0 %v948_v16, %s4788_s26  ;;  %v1326_v16 = vld [vmem:[%s4781_s3 + $0x10] sm:$0xff] }
 0x162   : > { %v771_v18 = vld [vmem:[#allocation2 + $0x76] sm:$0xff] }
 0x163   : > { %1113 = vrot.lane.b32.xlu1 %v947_v41, %s4788_s26  ;;  %v1327_v41 = vld [vmem:[%s4781_s3 + $0x18] sm:$0xff] }
 0x17d   : > { %v3983_v24 = vpop.permute.xlu0 %1075 }
 0x181   : > { %v3985_v25 = vpop.permute.xlu1 %1077 }
 0x18a   : > { %v1174_v30 = vpop.permute.xlu1 %1173 }
 0x18b   : > { %v1082_v31 = vpop.permute.xlu0 %1081 }
 0x18c   : > { %v1239_v32 = vsel %vm662_vm3, %v830_v58, %v1082_v31 }
 0x18d   : > { %v1263_v12 = vsel %vm1259_vm7, %v1239_v32, %v1174_v30  ;;  %v3191_v30 = vpack.c.bf16 %v1327_v41, %v1326_v16 }
 0x18e   : > { %1287 = vst.msk [vmem:[#allocation3 + $0x18] sm:$0xff] %vm1283_vm8, %v1263_v12  ;;  %v1328_v12 = vld [vmem:[%s4781_s3 + $0x20] sm:$0xff] }
 0x18f   : > { %v1084_v39 = vpop.permute.xlu0 %1083  ;;  %v3195_v15 = vpack.c.bf16 %v1329_v14, %v1328_v12  ;;  %v795_v12 = vld [vmem:[#allocation2 + $0x7f] sm:$0xff] }
 0x190   : > { %v1240_v47 = vsel %vm662_vm3, %v831_v42, %v1084_v39  ;;  %v791_v39 = vld [vmem:[#allocation2 + $0x5f] sm:$0xff] }
 0x191   : > { %v1086_v49 = vpop.permute.xlu1 %1085 }
 0x192   : > { %v1241_v60 = vsel %vm662_vm3, %v832_v51, %v1086_v49  ;;  %v1331_v49 = vld [vmem:[%s4781_s3 + $0x38] sm:$0xf]  ;;  %v769_v51 = vld [vmem:[#allocation2 + $0x66] sm:$0xff] }
 0x193   : > { %v1176_v48 = vpop.permute.xlu0 %1175  ;;  %v815_v5 = vmax.f32 %v769_v51, %v792_v54  ;;  %v797_v51 = vld [vmem:[#allocation2 + $0x8f] sm:$0xff] }
 0x194   : > { %v1264_v50 = vsel %vm1259_vm7, %v1240_v47, %v1176_v48 }
 0x195   : > { %1288 = vst.msk [vmem:[#allocation3 + $0x20] sm:$0xff] %vm1283_vm8, %v1264_v50  ;;  %v1178_v53 = vpop.permute.xlu1 %1177  ;;  %v814_v50 = vmax.f32 %v768_v37, %v791_v39 }
 0x196   : > { %v1265_v61 = vsel %vm1259_vm7, %v1241_v60, %v1178_v53  ;;  %v3199_v53 = vpack.c.bf16 %v1331_v49, %v1330_v35 }
 0x197   : > { %v1088_v56 = vpop.permute.xlu0 %1087  ;;  %1289 = vst.msk [vmem:[#allocation3 + $0x28] sm:$0xff] %vm1283_vm8, %v1265_v61  ;;  %v837_v1 = vmax.f32 %v3887_v8, %v814_v50  ;;  %v838_v8 = vmax.f32 %v3894_v26, %v815_v5 }
 0x198   : > { %v1242_v9 = vsel %vm662_vm3, %v833_v62, %v1088_v56  ;;  %v2788_v62 = vld [vmem:[%s4781_s3 + $0x80] sm:$0xff] }
 0x199   : > { %v1090_v40 = vpop.permute.xlu1 %1089 }
 0x19a   : > { %v1243_v58 = vsel %vm662_vm3, %v834_v57, %v1090_v40 }
 0x19b   : > { %v1180_v10 = vpop.permute.xlu0 %1179 }
 0x19c   : > { %v1266_v11 = vsel %vm1259_vm7, %v1242_v9, %v1180_v10  ;;  %v1332_v13 = vld [vmem:[#allocation3 + $0x1c] sm:$0xff]  ;;  %v793_v9 = vld [vmem:[#allocation2 + $0x6f] sm:$0xff] }
 0x19d   : > { %1290 = vst.msk [vmem:[#allocation3 + $0x30] sm:$0xff] %vm1283_vm8, %v1266_v11  ;;  %3059 = vmatprep.mubr.msk.f32.mxu1 %vm1283_vm8, %v1332_v13  ;;  %v1182_v27 = vpop.permute.xlu1 %1181  ;;  %v816_v57 = vmax.f32 %v770_v7, %v793_v9 }
 0x19e   : > { %v1267_v31 = vsel %vm1259_vm7, %v1243_v58, %v1182_v27  ;;  %v1333_v32 = vld [vmem:[#allocation3 + $0x24] sm:$0xff] }
 0x19f   : > { %v1092_v29 = vpop.permute.xlu0 %1091  ;;  %1291 = vst.msk [vmem:[#allocation3 + $0x38] sm:$0xff] %vm1283_vm8, %v1267_v31  ;;  %3060 = vmatmul.mubr.msk.f32.vlgmr.msra.gmra.mrb[0].mxu1 %vm1283_vm8, %v1333_v32  ;;  %v839_v26 = vmax.f32 %v3901_v45, %v816_v57  ;;  %v817_v31 = vmax.f32 %v771_v18, %v794_v20  ;;  %v772_v32 = vld [vmem:[#allocation2 + $0x7e] sm:$0xff]  ;;  %v773_v45 = vld [vmem:[#allocation2 + $0x86] sm:$0xff] }
 0x1a0   : > { %3190 = vmatpush3.bf16.msra.mxu1 %v3924_v38  ;;  %v1244_v42 = vsel %vm662_vm3, %v835_v33, %v1092_v29  ;;  %v836_v38 = vmax.f32 %v3880_v52, %v813_v36  ;;  %v2789_v52 = vld [vmem:[%s4781_s3 + $0x88] sm:$0xff] }
 0x1a1   : > { %v1094_v34 = vpop.permute.xlu1 %1093  ;;  %3192 = vmatprep.subr.bf16.mxu1 %v3191_v30  ;;  %v4047_v13 = vpack.c.bf16 %v2789_v52, %v2788_v62  ;;  %v798_v62 = vld [vmem:[#allocation2 + $0x97] sm:$0xff]  ;;  %v712_v20 = vld [vmem:[#allocation2 + $0x1] sm:$0xff] }
 0x1a2   : > { %v1245_v55 = vsel %vm662_vm3, %v836_v38, %v1094_v34  ;;  %v796_v34 = vld [vmem:[#allocation2 + $0x87] sm:$0xff] }
 0x1a3   : > { %v1184_v43 = vpop.permute.xlu0 %1183  ;;  %v819_v50 = vmax.f32 %v773_v45, %v796_v34  ;;  %v760_v45 = vld [vmem:[#allocation2 + $0x1e] sm:$0xff] }
 0x1a4   : > { %v1268_v47 = vsel %vm1259_vm7, %v1244_v42, %v1184_v43  ;;  %v1334_v48 = vld [vmem:[#allocation3 + $0x2c] sm:$0xff]  ;;  %3194 = vmatpush3.bf16.msra.mxu1 %v3191_v30  ;;  %v840_v42 = vmax.f32 %v3908_v63, %v817_v31  ;;  %v818_v43 = vmax.f32 %v772_v32, %v795_v12  ;;  %v783_v34 = vld [vmem:[#allocation2 + $0x1f] sm:$0xff] }
 0x1a5   : > { %1292 = vst.msk [vmem:[#allocation3 + $0x40] sm:$0xff] %vm1283_vm8, %v1268_v47  ;;  %3062 = vmatprep.mubr.msk.f32.mxu1 %vm1283_vm8, %v1334_v48  ;;  %v1186_v59 = vpop.permute.xlu1 %1185  ;;  %3196 = vmatprep.subr.bf16.mxu1 %v3195_v15  ;;  %v774_v63 = vld [vmem:[#allocation2 + $0x8e] sm:$0xff]  ;;  %v782_v31 = vld [vmem:[#allocation2 + $0x17] sm:$0xff] }
 0x1a6   : > { %v1269_v56 = vsel %vm1259_vm7, %v1245_v55, %v1186_v59  ;;  %v1335_v61 = vld [vmem:[#allocation3 + $0x34] sm:$0xff]  ;;  %v841_v38 = vmax.f32 %v3915_v21, %v818_v43 }
 0x1a7   : > { %v1096_v60 = vpop.permute.xlu0 %1095  ;;  %1293 = vst.msk [vmem:[#allocation3 + $0x48] sm:$0xff] %vm1283_vm8, %v1269_v56  ;;  %3063 = vmatmul.mubr.msk.f32.gmra.mrb[2].mxu1 %vm1283_vm8, %v1335_v61  ;;  %v842_v56 = vmax.f32 %v3930_v44, %v819_v50  ;;  %v820_v61 = vmax.f32 %v774_v63, %v797_v51  ;;  %v775_v21 = vld [vmem:[#allocation2 + $0x96] sm:$0xff] }
 0x1a8   : > { %3198 = vmatpush3.bf16.msra.mxu1 %v3195_v15  ;;  %v1246_v10 = vsel %vm662_vm3, %v837_v1, %v1096_v60  ;;  %v821_v44 = vmax.f32 %v775_v21, %v798_v62 }
 0x1a9   : > { %v1098_v11 = vpop.permute.xlu1 %1097  ;;  %3201 = vmatprep.subr.msk.bf16.mxu1 %vm3856_vm5, %v3199_v53 }
 0x1aa   : > { %v1247_v22 = vsel %vm662_vm3, %v838_v8, %v1098_v11  ;;  %v781_v11 = vld [vmem:[#allocation2 + $0xf] sm:$0xff] }
 0x1ab   : > { %v1188_v40 = vpop.permute.xlu0 %1187 }
 0x1ac   : > { %v1270_v16 = vsel %vm1259_vm7, %v1246_v10, %v1188_v40  ;;  %v1336_v41 = vld [vmem:[#allocation3 + $0x3c] sm:$0xff]  ;;  %3204 = vmatpush3.bf16.msk.msra.mxu1 %vm3856_vm5, %v3199_v53  ;;  %v758_v10 = vld [vmem:[#allocation2 + $0xe] sm:$0xff]  ;;  %v843_v40 = vmax.f32 %v3938_v0, %v820_v61 }
 0x1ad   : > { %1294 = vst.msk [vmem:[#allocation3 + $0x50] sm:$0xff] %vm1283_vm8, %v1270_v16  ;;  %3065 = vmatprep.mubr.msk.f32.mxu1 %vm1283_vm8, %v1336_v41  ;;  %v1190_v58 = vpop.permute.xlu1 %1189  ;;  %3206 = vmatprep.subr.bf16.mxu1 %v4047_v13  ;;  %v776_v16 = vld [vmem:[#allocation2 + $0x9e] sm:$0xff] }
 0x1ae   : > { %v1271_v29 = vsel %vm1259_vm7, %v1247_v22, %v1190_v58  ;;  %v1337_v30 = vld [vmem:[#allocation3 + $0x44] sm:$0xff]  ;;  %v799_v41 = vld [vmem:[#allocation2 + $0x9f] sm:$0xff] }
 0x1af   : > { %v1100_v27 = vpop.permute.xlu0 %1099  ;;  %1295 = vst.msk [vmem:[#allocation3 + $0x58] sm:$0xff] %vm1283_vm8, %v1271_v29  ;;  %3066 = vmatmul.mubr.msk.f32.gmra.mrb[4].mxu1 %vm1283_vm8, %v1337_v30  ;;  %v844_v29 = vmax.f32 %v3945_v23, %v821_v44  ;;  %v822_v0 = vmax.f32 %v776_v16, %v799_v41  ;;  %v689_v30 = vld [vmem:[#allocation2] sm:$0xff]  ;;  %v2794_v41 = vld [vmem:[%s4781_s3 + $0xb0] sm:$0xff] }
 0x1b0   : > { %v1248_v14 = vsel %vm662_vm3, %v839_v26, %v1100_v27  ;;  %v804_v27 = vmax.f32 %v758_v10, %v781_v11  ;;  %v759_v26 = vld [vmem:[#allocation2 + $0x16] sm:$0xff]  ;;  %v735_v32 = vmax.f32 %v689_v30, %v712_v20  ;;  %v2792_v10 = vld [vmem:[%s4781_s3 + $0xa0] sm:$0xff] }
 0x1b1   : > { %v1102_v36 = vpop.permute.xlu1 %1101  ;;  %v805_v43 = vmax.f32 %v759_v26, %v782_v31  ;;  %v845_v23 = vmax.f32 %v3952_v46, %v822_v0  ;;  %v1311_v16 = vld [vmem:[#allocation3 + $0x18] sm:$0xff]  ;;  %v1314_v20 = vld [vmem:[#allocation3 + $0x30] sm:$0xff] }
 0x1b2   : > { %v1249_v15 = vsel %vm662_vm3, %v840_v42, %v1102_v36  ;;  %v713_v36 = vld [vmem:[#allocation2 + $0x9] sm:$0xff]  ;;  %v827_v42 = vmax.f32 %v735_v32, %v804_v27 }
 0x1b3   : > { %v1192_v33 = vpop.permute.xlu0 %1191  ;;  %v1317_v27 = vld [vmem:[#allocation3 + $0x48] sm:$0xff] }
 0x1b4   : > { %v1272_v37 = vsel %vm1259_vm7, %v1248_v14, %v1192_v33  ;;  %v1338_v39 = vld [vmem:[#allocation3 + $0x4c] sm:$0xff] }
 0x1b5   : > { %1296 = vst.msk [vmem:[#allocation3 + $0x60] sm:$0xff] %vm1283_vm8, %v1272_v37  ;;  %3068 = vmatprep.mubr.msk.f32.mxu1 %vm1283_vm8, %v1338_v39  ;;  %v1194_v47 = vpop.permute.xlu1 %1193 }
 0x1b6   : > { %v1273_v35 = vsel %vm1259_vm7, %v1249_v15, %v1194_v47  ;;  %v1339_v49 = vld [vmem:[#allocation3 + $0x54] sm:$0xff]  ;;  %v690_v15 = vld [vmem:[#allocation2 + $0x8] sm:$0xff]  ;;  %v1236_v47 = vsel %vm662_vm3, %v827_v42, %v3983_v24 }
 0x1b7   : > { %v1104_v48 = vpop.permute.xlu0 %1103  ;;  %1297 = vst.msk [vmem:[#allocation3 + $0x68] sm:$0xff] %vm1283_vm8, %v1273_v35  ;;  %3069 = vmatmul.mubr.msk.f32.gmra.mrb[6].mxu1 %vm1283_vm8, %v1339_v49  ;;  %v1319_v0 = vld [vmem:[#allocation3 + $0x58] sm:$0xff] }
 0x1b8   : > { %v1250_v54 = vsel %vm662_vm3, %v841_v38, %v1104_v48  ;;  %v736_v48 = vmax.f32 %v690_v15, %v713_v36  ;;  %v2154_v36 = vld [vmem:[%s4783_s5 + $0x8] sm:$0xff] }
 0x1b9   : > { %v1106_v59 = vpop.permute.xlu1 %1105 }
 0x1ba   : > { %v1251_v52 = vsel %vm662_vm3, %v842_v56, %v1106_v59  ;;  %v828_v46 = vmax.f32 %v736_v48, %v805_v43  ;;  %v2157_v43 = vld [vmem:[%s4783_s5 + $0x20] sm:$0xff] }
 0x1bb   : > { %v1196_v55 = vpop.permute.xlu0 %1195  ;;  %v2165_v48 = vld [vmem:[%s4783_s5 + $0x60] sm:$0xff] }
 0x1bc   : > { %v1274_v60 = vsel %vm1259_vm7, %v1250_v54, %v1196_v55  ;;  %v1340_v53 = vld [vmem:[#allocation3 + $0x5c] sm:$0xff]  ;;  %v806_v54 = vmax.f32 %v760_v45, %v783_v34  ;;  %v1237_v24 = vsel %vm662_vm3, %v828_v46, %v3985_v25  ;;  %v2790_v25 = vld [vmem:[%s4781_s3 + $0x90] sm:$0xff] }
 0x1bd   : > { %1298 = vst.msk [vmem:[#allocation3 + $0x70] sm:$0xff] %vm1283_vm8, %v1274_v60  ;;  %3071 = vmatprep.mubr.msk.f32.mxu1 %vm1283_vm8, %v1340_v53  ;;  %v1198_v1 = vpop.permute.xlu1 %1197  ;;  %v1320_v30 = vld [vmem:[#allocation3 + $0x60] sm:$0xff] }
 0x1be   : > { %v1275_v7 = vsel %vm1259_vm7, %v1251_v52, %v1198_v1  ;;  %v1341_v9 = vld [vmem:[#allocation3 + $0x64] sm:$0xff]  ;;  %v829_v56 = vmax.f32 %v3796_v2, %v806_v54  ;;  %v2791_v2 = vld [vmem:[%s4781_s3 + $0x98] sm:$0xff] }
 0x1bf   : > { %v1108_v5 = vpop.permute.xlu0 %1107  ;;  %1299 = vst.msk [vmem:[#allocation3 + $0x78] sm:$0xff] %vm1283_vm8, %v1275_v7  ;;  %3072 = vmatmul.mubr.msk.f32.gmra.mrb[8].mxu1 %vm1283_vm8, %v1341_v9  ;;  %v3209_v9 = vpack.c.bf16 %v2791_v2, %v2790_v25  ;;  %v1321_v26 = vld [vmem:[#allocation3 + $0x68] sm:$0xff]  ;;  %v2166_v45 = vld [vmem:[%s4783_s5 + $0x68] sm:$0xff] }
 0x1c0   : > { %v1252_v8 = vsel %vm662_vm3, %v843_v40, %v1108_v5  ;;  %v2793_v40 = vld [vmem:[%s4781_s3 + $0xa8] sm:$0xff] }
 0x1c1   : > { %v1110_v18 = vpop.permute.xlu1 %1109  ;;  %v3213_v11 = vpack.c.bf16 %v2793_v40, %v2792_v10  ;;  %v2178_v54 = vld [vmem:[%s4783_s5 + $0xc8] sm:$0xff]  ;;  %v2185_v40 = vld [vmem:[%s4783_s5 + $0x100] sm:$0xff] }
 0x1c2   : > { %v1253_v12 = vsel %vm662_vm3, %v844_v29, %v1110_v18  ;;  %v1313_v18 = vld [vmem:[#allocation3 + $0x28] sm:$0xff]  ;;  %v1318_v29 = vld [vmem:[#allocation3 + $0x50] sm:$0xff]  ;;  %v2182_v46 = vld [vmem:[%s4783_s5 + $0xe8] sm:$0xff] }
 0x1c3   : > { %v1200_v57 = vpop.permute.xlu0 %1199 }
 0x1c4   : > { %v1276_v22 = vsel %vm1259_vm7, %v1252_v8, %v1200_v57  ;;  %v1342_v58 = vld [vmem:[#allocation3 + $0x6c] sm:$0xff]  ;;  %v1312_v57 = vld [vmem:[#allocation3 + $0x20] sm:$0xff] }
 0x1c5   : > { %1300 = vst.msk [vmem:[#allocation3 + $0x80] sm:$0xff] %vm1283_vm8, %v1276_v22  ;;  %3074 = vmatprep.mubr.msk.f32.mxu1 %vm1283_vm8, %v1342_v58  ;;  %v1202_v14 = vpop.permute.xlu1 %1201  ;;  %v2795_v8 = vld [vmem:[%s4781_s3 + $0xb8] sm:$0xf]  ;;  %v1315_v22 = vld [vmem:[#allocation3 + $0x38] sm:$0xff]  ;;  %v1316_v58 = vld [vmem:[#allocation3 + $0x40] sm:$0xff] }
 0x1c6   : > { %v1277_v37 = vsel %vm1259_vm7, %v1253_v12, %v1202_v14  ;;  %v1343_v39 = vld [vmem:[#allocation3 + $0x74] sm:$0xff] }
 0x1c7   : > { %v1112_v33 = vpop.permute.xlu0 %1111  ;;  %1301 = vst.msk [vmem:[#allocation3 + $0x88] sm:$0xff] %vm1283_vm8, %v1277_v37  ;;  %3075 = vmatmul.mubr.msk.f32.gmra.mrb[10].mxu1 %vm1283_vm8, %v1343_v39  ;;  %v1322_v31 = vld [vmem:[#allocation3 + $0x70] sm:$0xff]  ;;  %v1323_v19 = vld [vmem:[#allocation3 + $0x78] sm:$0x1]  ;;  %v2158_v37 = vld [vmem:[%s4783_s5 + $0x28] sm:$0xff] }
 0x1c8   : > { %v1254_v35 = vsel %vm662_vm3, %v845_v23, %v1112_v33  ;;  %v1757_v32 = vld [vmem:[#allocation3 + $0x78] sm:$0xff]  ;;  %v3223_v42 = vpack.c.bf16 %v2158_v37, %v2154_v36  ;;  %v2162_v23 = vld [vmem:[%s4783_s5 + $0x48] sm:$0xff] }
 0x1c9   : > { %v1204_v49 = vpop.permute.xlu1 %1203  ;;  %v2153_v39 = vld [vmem:[%s4783_s5] sm:$0xff]  ;;  %v3227_v15 = vpack.c.bf16 %v2166_v45, %v2162_v23 }
 0x1ca   : > { %v1278_v50 = vsel %vm1259_vm7, %v1254_v35, %v1204_v49  ;;  %v3225_v34 = vpack.c.bf16 %v2157_v43, %v2153_v39  ;;  %v2170_v35 = vld [vmem:[%s4783_s5 + $0x88] sm:$0xff]  ;;  %3224 = vmatprep.subr.bf16.mxu0 %v3223_v42  ;;  %v2201_v37 = vld [vmem:[%s4783_s5 + $0x180] sm:$0xff] }
 0x1cb   : > { %v1168_v38 = vpop.permute.xlu0 %1167  ;;  %1302 = vst.msk [vmem:[#allocation3 + $0x90] sm:$0xff] %vm1283_vm8, %v1278_v50  ;;  %v2174_v49 = vld [vmem:[%s4783_s5 + $0xa8] sm:$0xff]  ;;  %v2205_v39 = vld [vmem:[%s4783_s5 + $0x1a0] sm:$0xff] }
 0x1cc   : > { %v1260_v63 = vsel %vm1259_vm7, %v1236_v47, %v1168_v38  ;;  %v1344_v51 = vld [vmem:[#allocation3 + $0x7c] sm:$0xff]  ;;  %3226 = vmatpush1.bf16.msra.mxu0 %v3225_v34  ;;  %v3231_v50 = vpack.c.bf16 %v2174_v49, %v2170_v35  ;;  %v3249_v23 = vpack.c.bf16 %v2205_v39, %v2201_v37 }
 0x1cd   : > { %1284 = vst.msk [vmem:[#allocation3] sm:$0xff] %vm1283_vm8, %v1260_v63  ;;  %3077 = vmatprep.mubr.msk.f32.mxu1 %vm1283_vm8, %v1344_v51  ;;  %v1170_v55 = vpop.permute.xlu1 %1169  ;;  %v1758_v12 = vld [vmem:[#allocation3 + $0x80] sm:$0xff]  ;;  %v2161_v47 = vld [vmem:[%s4783_s5 + $0x40] sm:$0xff]  ;;  %3228 = vmatprep.subr.bf16.mxu0 %v3227_v15 }
 0x1ce   : > { %v1261_v59 = vsel %vm1259_vm7, %v1237_v24, %v1170_v55  ;;  %v1345_v53 = vld [vmem:[#allocation3 + $0x84] sm:$0xff]  ;;  %v3229_v38 = vpack.c.bf16 %v2165_v48, %v2161_v47  ;;  %v2169_v63 = vld [vmem:[%s4783_s5 + $0x80] sm:$0xff]  ;;  %v3235_v55 = vpack.c.bf16 %v2182_v46, %v2178_v54 }
 0x1cf   : > { %v1080_v60 = vpop.permute.xlu0 %1079  ;;  %1285 = vst.msk [vmem:[#allocation3 + $0x8] sm:$0xff] %vm1283_vm8, %v1261_v59  ;;  %3078 = vmatmul.mubr.msk.f32.gmra.mrb[12].mxu1 %vm1283_vm8, %v1345_v53  ;;  %v1759_v14 = vld [vmem:[#allocation3 + $0x88] sm:$0xff]  ;;  %v2173_v51 = vld [vmem:[%s4783_s5 + $0xa0] sm:$0xff]  ;;  %v2186_v53 = vld [vmem:[%s4783_s5 + $0x108] sm:$0xff] }
 0x1d0   : > { %v1238_v61 = vsel %vm662_vm3, %v829_v56, %v1080_v60  ;;  %3230 = vmatpush1.bf16.msra.mxu0 %v3229_v38  ;;  %v3233_v24 = vpack.c.bf16 %v2173_v51, %v2169_v63  ;;  %v2177_v59 = vld [vmem:[%s4783_s5 + $0xc0] sm:$0xff]  ;;  %v2190_v56 = vld [vmem:[%s4783_s5 + $0x128] sm:$0xff] }
 0x1d1   : > { %v1172_v21 = vpop.permute.xlu1 %1171  ;;  %3232 = vmatprep.subr.bf16.mxu0 %v3231_v50  ;;  %v2181_v60 = vld [vmem:[%s4783_s5 + $0xe0] sm:$0xff]  ;;  %v3239_v10 = vpack.c.bf16 %v2190_v56, %v2186_v53  ;;  %v2210_v42 = vld [vmem:[%s4783_s5 + $0x1c8] sm:$0xff] }
 0x1d2   : > { %v1262_v62 = vsel %vm1259_vm7, %v1238_v61, %v1172_v21  ;;  %v1346_v52 = vld [vmem:[#allocation3 + $0x8c] sm:$0xff]  ;;  %v1347_v1 = vld [vmem:[#allocation3 + $0x94] sm:$0x1]  ;;  %v2214_v43 = vld [vmem:[%s4783_s5 + $0x1e8] sm:$0xff] }
 0x1d3   : > { %1286 = vst.msk [vmem:[#allocation3 + $0x10] sm:$0xff] %vm1283_vm8, %v1262_v62  ;;  %3080 = vmatprep.mubr.msk.f32.mxu1 %vm1283_vm8, %v1346_v52  ;;  %v1760_v33 = vld [vmem:[#allocation3 + $0x90] sm:$0xff]  ;;  %v2155_v62 = vld [vmem:[%s4783_s5 + $0x10] sm:$0xff]  ;;  %v3251_v45 = vpack.c.bf16 %v2214_v43, %v2210_v42  ;;  %v2209_v34 = vld [vmem:[%s4783_s5 + $0x1c0] sm:$0xff] }
 0x1d4   : > { %3081 = vmatmul.mubr.msk.f32.gmra.mrb[14].mxu1 %vm1283_vm8, %v1347_v1  ;;  %v1308_v5 = vld [vmem:[#allocation3] sm:$0xff]  ;;  %v2156_v61 = vld [vmem:[%s4783_s5 + $0x18] sm:$0xff]  ;;  %v2159_v52 = vld [vmem:[%s4783_s5 + $0x30] sm:$0xff]  ;;  %3234 = vmatpush1.bf16.msra.mxu0 %v3233_v24  ;;  %v3237_v1 = vpack.c.bf16 %v2181_v60, %v2177_v59 }
 0x1d5   : > { %3099 = vmatprep.mubr.msk.f32.mxu1 %vm1283_vm8, %v1308_v5  ;;  %v2160_v21 = vld [vmem:[%s4783_s5 + $0x38] sm:$0xff]  ;;  %v3273_v2 = vpack.c.bf16 %v2159_v52, %v2155_v62  ;;  %3236 = vmatprep.subr.bf16.mxu0 %v3235_v55  ;;  %v2213_v15 = vld [vmem:[%s4783_s5 + $0x1e0] sm:$0xff]  ;;  %v2218_v47 = vld [vmem:[%s4783_s5 + $0x208] sm:$0xff] }
 0x1d6   : > { %v1309_v7 = vld [vmem:[#allocation3 + $0x8] sm:$0xff]  ;;  %v3271_v25 = vpack.c.bf16 %v2160_v21, %v2156_v61  ;;  %v2164_v5 = vld [vmem:[%s4783_s5 + $0x58] sm:$0xff]  ;;  %v2222_v48 = vld [vmem:[%s4783_s5 + $0x228] sm:$0xff]  ;;  %v3253_v35 = vpack.c.bf16 %v2213_v15, %v2209_v34 }
 0x1d7   : > { %v3255_v49 = vpack.c.bf16 %v2222_v48, %v2218_v47  ;;  %v2217_v38 = vld [vmem:[%s4783_s5 + $0x200] sm:$0xff]  ;;  %v2226_v43 = vld [vmem:[%s4783_s5 + $0x248] sm:$0xff]  ;;  %v2188_v47 = vld [vmem:[%s4783_s5 + $0x118] sm:$0xff] }
 0x1d8   : > { %3100 = vmatmul.mubr.msk.f32.vlgmr.msra.gmra.mrb[0].mxu1 %vm1283_vm8, %v1309_v7  ;;  %v2168_v7 = vld [vmem:[%s4783_s5 + $0x78] sm:$0xff]  ;;  %3238 = vmatpush1.bf16.msra.mxu0 %v3237_v1  ;;  %v2221_v50 = vld [vmem:[%s4783_s5 + $0x220] sm:$0xff] }
 0x1d9   : > { %3208 = vmatpush3.bf16.msra.mxu1 %v4047_v13  ;;  %v3217_v13 = vpack.c.bf16 %v2795_v8, %v2794_v41  ;;  %v2194_v41 = vld [vmem:[%s4783_s5 + $0x148] sm:$0xff]  ;;  %3240 = vmatprep.subr.bf16.mxu0 %v3239_v10  ;;  %v3257_v63 = vpack.c.bf16 %v2221_v50, %v2217_v38  ;;  %v2813_v51 = vld [vmem:[%s4782_s4] ss:$0 sm:$0xff]  ;;  %v2192_v48 = vld [vmem:[%s4783_s5 + $0x138] sm:$0xff] }
 0x1da   : > { %v1310_v44 = vld [vmem:[#allocation3 + $0x10] sm:$0xff]  ;;  %3210 = vmatprep.subr.bf16.mxu1 %v3209_v9  ;;  %v2198_v8 = vld [vmem:[%s4783_s5 + $0x168] sm:$0xff]  ;;  %v2229_v15 = vld [vmem:[%s4783_s5 + $0x260] sm:$0xff] }
 0x1db   : > { %3102 = vmatprep.mubr.msk.f32.mxu1 %vm1283_vm8, %v1310_v44  ;;  %v2189_v44 = vld [vmem:[%s4783_s5 + $0x120] sm:$0xff] }
 0x1dc   : > { %3103 = vmatmul.mubr.msk.f32.gmra.mrb[2].mxu1 %vm1283_vm8, %v1311_v16  ;;  %v2167_v16 = vld [vmem:[%s4783_s5 + $0x70] sm:$0xff] }
 0x1dd   : > { %3105 = vmatprep.mubr.msk.f32.mxu1 %vm1283_vm8, %v1312_v57  ;;  %3212 = vmatpush3.bf16.msra.mxu1 %v3209_v9  ;;  %v2163_v9 = vld [vmem:[%s4783_s5 + $0x50] sm:$0xff]  ;;  %v2172_v57 = vld [vmem:[%s4783_s5 + $0x98] sm:$0xff] }
 0x1de   : > { %3214 = vmatprep.subr.bf16.mxu1 %v3213_v11 }
 0x1e0   : > { %3106 = vmatmul.mubr.msk.f32.gmra.mrb[4].mxu1 %vm1283_vm8, %v1313_v18  ;;  %v2176_v18 = vld [vmem:[%s4783_s5 + $0xb8] sm:$0xff] }
 0x1e1   : > { %3108 = vmatprep.mubr.msk.f32.mxu1 %vm1283_vm8, %v1314_v20  ;;  %3216 = vmatpush3.bf16.msra.mxu1 %v3213_v11  ;;  %v3275_v11 = vpack.c.bf16 %v2168_v7, %v2164_v5  ;;  %v3241_v20 = vpack.c.bf16 %v2189_v44, %v2185_v40 }
 0x1e2   : > { %3219 = vmatprep.subr.msk.bf16.mxu1 %vm3856_vm5, %v3217_v13 }
 0x1e3   : > { %3242 = vmatpush1.bf16.msra.mxu0 %v3241_v20 }
 0x1e4   : > { %3109 = vmatmul.mubr.msk.f32.gmra.mrb[6].mxu1 %vm1283_vm8, %v1315_v22 }
 0x1e5   : > { %3111 = vmatprep.mubr.msk.f32.mxu1 %vm1283_vm8, %v1316_v58  ;;  %3222 = vmatpush3.bf16.msk.msra.mxu1 %vm3856_vm5, %v3217_v13  ;;  %v3277_v13 = vpack.c.bf16 %v2167_v16, %v2163_v9 }
 0x1e6   : > { %3272 = vmatprep.subr.bf16.mxu1 %v3271_v25 }
 0x1e8   : > { %3112 = vmatmul.mubr.msk.f32.gmra.mrb[8].mxu1 %vm1283_vm8, %v1317_v27 }
 0x1e9   : > { %3114 = vmatprep.mubr.msk.f32.mxu1 %vm1283_vm8, %v1318_v29 }
 0x1ec   : > { %3115 = vmatmul.mubr.msk.f32.gmra.mrb[10].mxu1 %vm1283_vm8, %v1319_v0 }
 0x1ed   : > { %3117 = vmatprep.mubr.msk.f32.mxu1 %vm1283_vm8, %v1320_v30 }
 0x1f0   : > { %3118 = vmatmul.mubr.msk.f32.gmra.mrb[12].mxu1 %vm1283_vm8, %v1321_v26 }
 0x1f1   : > { %3120 = vmatprep.mubr.msk.f32.mxu1 %vm1283_vm8, %v1322_v31 }
 0x1f4   : > { %3121 = vmatmul.mubr.msk.f32.gmra.mrb[14].mxu1 %vm1283_vm8, %v1323_v19  ;;  %v2202_v19 = vld [vmem:[%s4783_s5 + $0x188] sm:$0xff] }
 0x1f5   : > { %3139 = vmatprep.mubr.msk.f32.mxu1 %vm1283_vm8, %v1315_v22  ;;  %v2193_v22 = vld [vmem:[%s4783_s5 + $0x140] sm:$0xff] }
 0x1f8   : > { %3140 = vmatmul.mubr.msk.f32.vlgmr.msra.gmra.mrb[0].mxu1 %vm1283_vm8, %v1316_v58  ;;  %v3279_v58 = vpack.c.bf16 %v2176_v18, %v2172_v57 }
 0x1f9   : > { %3142 = vmatprep.mubr.msk.f32.mxu1 %vm1283_vm8, %v1317_v27  ;;  %3274 = vmatpush1.bf16.msra.mxu1 %v3273_v2  ;;  %v2171_v27 = vld [vmem:[%s4783_s5 + $0x90] sm:$0xff] }
 0x1fa   : > { %3276 = vmatprep.subr.bf16.mxu1 %v3275_v11 }
 0x1fc   : > { %3143 = vmatmul.mubr.msk.f32.gmra.mrb[2].mxu1 %vm1283_vm8, %v1318_v29  ;;  %v2175_v29 = vld [vmem:[%s4783_s5 + $0xb0] sm:$0xff] }
 0x1fd   : > { %3145 = vmatprep.mubr.msk.f32.mxu1 %vm1283_vm8, %v1319_v0  ;;  %v3243_v0 = vpack.c.bf16 %v2198_v8, %v2194_v41  ;;  %3278 = vmatpush1.bf16.msra.mxu1 %v3277_v13 }
 0x1fe   : > { %3280 = vmatprep.subr.bf16.mxu1 %v3279_v58 }
 0x1ff   : > { %3244 = vmatprep.subr.bf16.mxu0 %v3243_v0 }
 0x200   : > { %3146 = vmatmul.mubr.msk.f32.gmra.mrb[4].mxu1 %vm1283_vm8, %v1320_v30  ;;  %v2197_v30 = vld [vmem:[%s4783_s5 + $0x160] sm:$0xff] }
 0x201   : > { %3148 = vmatprep.mubr.msk.f32.mxu1 %vm1283_vm8, %v1321_v26  ;;  %v2180_v26 = vld [vmem:[%s4783_s5 + $0xd8] sm:$0xff] }
 0x204   : > { %3149 = vmatmul.mubr.msk.f32.gmra.mrb[6].mxu1 %vm1283_vm8, %v1322_v31  ;;  %v2184_v31 = vld [vmem:[%s4783_s5 + $0xf8] sm:$0xff] }
 0x205   : > { %3151 = vmatprep.mubr.msk.f32.mxu1 %vm1283_vm8, %v1757_v32  ;;  %v2206_v32 = vld [vmem:[%s4783_s5 + $0x1a8] sm:$0xff] }
 0x206   : > { %v3247_v36 = vpack.c.bf16 %v2206_v32, %v2202_v19 }
 0x208   : > { %3152 = vmatmul.mubr.msk.f32.gmra.mrb[8].mxu1 %vm1283_vm8, %v1758_v12  ;;  %v3281_v12 = vpack.c.bf16 %v2175_v29, %v2171_v27 }
 0x209   : > { %3154 = vmatprep.mubr.msk.f32.mxu1 %vm1283_vm8, %v1759_v14  ;;  %v3245_v14 = vpack.c.bf16 %v2197_v30, %v2193_v22 }
 0x20a   : > { %3282 = vmatpush1.bf16.msra.mxu1 %v3281_v12 }
 0x20b   : > { %3246 = vmatpush1.bf16.msra.mxu0 %v3245_v14 }
 0x20c   : > { %3155 = vmatmul.mubr.msk.f32.gmra.mrb[10].mxu1 %vm1283_vm8, %v1760_v33  ;;  %v3283_v33 = vpack.c.bf16 %v2184_v31, %v2180_v26  ;;  %3248 = vmatprep.subr.bf16.mxu0 %v3247_v36  ;;  %v2183_v36 = vld [vmem:[%s4783_s5 + $0xf0] sm:$0xff] }
 0x20e   : > { %3284 = vmatprep.subr.bf16.mxu1 %v3283_v33  ;;  %v2179_v33 = vld [vmem:[%s4783_s5 + $0xd0] sm:$0xff] }
 0x20f   : > { %3250 = vmatpush1.bf16.msra.mxu0 %v3249_v23  ;;  %v3285_v39 = vpack.c.bf16 %v2183_v36, %v2179_v33  ;;  %v2230_v23 = vld [vmem:[%s4783_s5 + $0x268] sm:$0xff]  ;;  %v2241_v33 = vld [vmem:[%s4783_s5 + $0x2c0] sm:$0xff] }
 0x210   : > { %3252 = vmatprep.subr.bf16.mxu0 %v3251_v45  ;;  %v2225_v45 = vld [vmem:[%s4783_s5 + $0x240] sm:$0xff]  ;;  %v3259_v34 = vpack.c.bf16 %v2230_v23, %v2226_v43  ;;  %v920_v43 = vld [vmem:[#allocation2 + $0xb8] sm:$0xff] }
 0x211   : > { %3286 = vmatpush1.bf16.msra.mxu1 %v3285_v39  ;;  %v2220_v39 = vld [vmem:[%s4783_s5 + $0x218] sm:$0xff] }
 0x213   : > { %3254 = vmatpush1.bf16.msra.mxu0 %v3253_v35  ;;  %v3261_v35 = vpack.c.bf16 %v2229_v15, %v2225_v45  ;;  %v2223_v15 = vld [vmem:[%s4783_s5 + $0x230] sm:$0xff] }
 0x214   : > { %3256 = vmatprep.subr.bf16.mxu0 %v3255_v49  ;;  %v3287_v49 = vpack.c.bf16 %v2192_v48, %v2188_v47  ;;  %v2228_v47 = vld [vmem:[%s4783_s5 + $0x258] sm:$0xff] }
 0x216   : > { %3288 = vmatprep.subr.bf16.mxu1 %v3287_v49  ;;  %v923_v49 = vld [vmem:[#allocation2 + $0xb9] sm:$0xff] }
 0x217   : > { %3258 = vmatpush1.bf16.msra.mxu0 %v3257_v63  ;;  %v2187_v63 = vld [vmem:[%s4783_s5 + $0x110] sm:$0xff] }
 0x218   : > { %3260 = vmatprep.subr.bf16.mxu0 %v3259_v34  ;;  %v2219_v34 = vld [vmem:[%s4783_s5 + $0x210] sm:$0xff] }
 0x21b   : > { %3262 = vmatpush1.bf16.msra.mxu0 %v3261_v35 }
 0x2cb   : > { %v3141_v54 = vpop.f32.mrb[0].mxu1 }
 0x2cc   : > { %v1994_v46 = vadd.f32 %v3141_v54, %v2813_v51  ;;  %v1891_v24 = vpop.f32.mrb[1].mxu1 }
 0x2cd   : > { %v1993_v55 = vadd.f32 %v2813_v51, %v1891_v24  ;;  %v2200_v24 = vld [vmem:[%s4783_s5 + $0x178] sm:$0xff] }
 0x2ce   : > { %v2010_v59 = vmax.f32 %v1994_v46, 0.0  ;;  %v2196_v46 = vld [vmem:[%s4783_s5 + $0x158] sm:$0xff] }
 0x2cf   : > { %v2009_v60 = vmax.f32 %v1993_v55, 0.0  ;;  %v3144_v53 = vpop.f32.mrb[2].mxu1  ;;  %v2195_v55 = vld [vmem:[%s4783_s5 + $0x150] sm:$0xff] }
 0x2d0   : > { %2027 = vst.msk [vmem:[#allocation4 + $0x8] sm:$0xff] %vm2025_vm9, %v2010_v59  ;;  %v1996_v56 = vadd.f32 %v3144_v53, %v2813_v51  ;;  %v1901_v61 = vpop.f32.mrb[3].mxu1  ;;  %v3291_v59 = vpack.c.bf16 %v2200_v24, %v2196_v46  ;;  %v2234_v53 = vld [vmem:[%s4783_s5 + $0x288] sm:$0xff]  ;;  %v3305_v46 = vpack.c.bf16 %v2223_v15, %v2219_v34  ;;  %v1116_v15 = vpop.permute.xlu0 %1115 }
 0x2d1   : > { %2026 = vst.msk [vmem:[#allocation4] sm:$0xff] %vm2025_vm9, %v2009_v60  ;;  %v1995_v21 = vadd.f32 %v2813_v51, %v1901_v61  ;;  %v2199_v60 = vld [vmem:[%s4783_s5 + $0x170] sm:$0xff] }
 0x2d2   : > { %v2012_v62 = vmax.f32 %v1996_v56, 0.0  ;;  %v2238_v56 = vld [vmem:[%s4783_s5 + $0x2a8] sm:$0xff] }
 0x2d3   : > { %v2011_v52 = vmax.f32 %v1995_v21, 0.0  ;;  %v3147_v1 = vpop.f32.mrb[4].mxu1  ;;  %v3293_v21 = vpack.c.bf16 %v2199_v60, %v2195_v55 }
 0x2d4   : > { %2029 = vst.msk [vmem:[#allocation4 + $0x18] sm:$0xff] %vm2025_vm9, %v2012_v62  ;;  %v1998_v25 = vadd.f32 %v3147_v1, %v2813_v51  ;;  %v1911_v2 = vpop.f32.mrb[5].mxu1  ;;  %v3263_v62 = vpack.c.bf16 %v2238_v56, %v2234_v53  ;;  %v2227_v56 = vld [vmem:[%s4783_s5 + $0x250] sm:$0xff] }
 0x2d5   : > { %2028 = vst.msk [vmem:[#allocation4 + $0x10] sm:$0xff] %vm2025_vm9, %v2011_v52  ;;  %v1997_v5 = vadd.f32 %v2813_v51, %v1911_v2 }
 0x2d6   : > { %v2014_v7 = vmax.f32 %v1998_v25, 0.0  ;;  %3264 = vmatprep.subr.bf16.mxu0 %v3263_v62  ;;  %v2231_v62 = vld [vmem:[%s4783_s5 + $0x270] sm:$0xff] }
 0x2d7   : > { %v2013_v9 = vmax.f32 %v1997_v5, 0.0  ;;  %v3150_v10 = vpop.f32.mrb[6].mxu1  ;;  %v2233_v5 = vld [vmem:[%s4783_s5 + $0x280] sm:$0xff] }
 0x2d8   : > { %2031 = vst.msk [vmem:[#allocation4 + $0x28] sm:$0xff] %vm2025_vm9, %v2014_v7  ;;  %v2000_v40 = vadd.f32 %v3150_v10, %v2813_v51  ;;  %v1921_v44 = vpop.f32.mrb[7].mxu1  ;;  %v2043_v22 = vld [vmem:[#allocation4] sm:$0xff] }
 0x2d9   : > { %2030 = vst.msk [vmem:[#allocation4 + $0x20] sm:$0xff] %vm2025_vm9, %v2013_v9  ;;  %v1999_v11 = vadd.f32 %v2813_v51, %v1921_v44  ;;  %v2051_v58 = vld [vmem:[#allocation4 + $0x2] sm:$0xff]  ;;  %v2204_v9 = vld [vmem:[%s4783_s5 + $0x198] sm:$0xff]  ;;  %v2203_v44 = vld [vmem:[%s4783_s5 + $0x190] sm:$0xff] }
 0x2da   : > { %v2016_v16 = vmax.f32 %v2000_v40, 0.0  ;;  %v2059_v32 = vmax.f32 %v2043_v22, %v2051_v58  ;;  %v2237_v7 = vld [vmem:[%s4783_s5 + $0x2a0] sm:$0xff]  ;;  %v2208_v40 = vld [vmem:[%s4783_s5 + $0x1b8] sm:$0xff]  ;;  %v2215_v22 = vld [vmem:[%s4783_s5 + $0x1f0] sm:$0xff] }
 0x2db   : > { %v2015_v41 = vmax.f32 %v1999_v11, 0.0  ;;  %v3153_v8 = vpop.f32.mrb[8].mxu1  ;;  %v3265_v10 = vpack.c.bf16 %v2237_v7, %v2233_v5  ;;  %v2207_v11 = vld [vmem:[%s4783_s5 + $0x1b0] sm:$0xff]  ;;  %v2249_v5 = vld [vmem:[%s4783_s5 + $0x300] sm:$0xff]  ;;  %v2236_v7 = vld [vmem:[%s4783_s5 + $0x298] sm:$0xff] }
 0x2dc   : > { %2033 = vst.msk [vmem:[#allocation4 + $0x38] sm:$0xff] %vm2025_vm9, %v2016_v16  ;;  %v2002_v57 = vadd.f32 %v3153_v8, %v2813_v51  ;;  %v1931_v13 = vpop.f32.mrb[9].mxu1  ;;  %v3297_v8 = vpack.c.bf16 %v2207_v11, %v2203_v44  ;;  %v871_v58 = vld [vmem:[#allocation2 + $0xaa] sm:$0xff]  ;;  %v973_v44 = vld [vmem:[#allocation2 + $0xb4] sm:$0x1] }
 0x2dd   : > { %2032 = vst.msk [vmem:[#allocation4 + $0x30] sm:$0xff] %vm2025_vm9, %v2015_v41  ;;  %v2001_v18 = vadd.f32 %v2813_v51, %v1931_v13  ;;  %v3295_v41 = vpack.c.bf16 %v2208_v40, %v2204_v9  ;;  %v2216_v13 = vld [vmem:[%s4783_s5 + $0x1f8] sm:$0xff]  ;;  %3266 = vmatpush1.bf16.msra.mxu0 %v3265_v10  ;;  %v996_v11 = vld [vmem:[#allocation2 + $0xb5] sm:$0x1] }
 0x2de   : > { %v2018_v20 = vmax.f32 %v2002_v57, 0.0  ;;  %v2212_v57 = vld [vmem:[%s4783_s5 + $0x1d8] sm:$0xff] }
 0x2df   : > { %v2017_v27 = vmax.f32 %v2001_v18, 0.0  ;;  %v3156_v29 = vpop.f32.mrb[10].mxu1  ;;  %v3299_v18 = vpack.c.bf16 %v2216_v13, %v2212_v57  ;;  %v2240_v9 = vld [vmem:[%s4783_s5 + $0x2b8] sm:$0xff]  ;;  %v2235_v13 = vld [vmem:[%s4783_s5 + $0x290] sm:$0xff] }
 0x2e0   : > { %2035 = vst.msk [vmem:[#allocation4 + $0x48] sm:$0xff] %vm2025_vm9, %v2018_v20  ;;  %v2004_v0 = vadd.f32 %v3156_v29, %v2813_v51  ;;  %v1941_v30 = vpop.f32.mrb[11].mxu1  ;;  %v2067_v26 = vld [vmem:[#allocation4 + $0x1c] sm:$0xff]  ;;  %v2211_v20 = vld [vmem:[%s4783_s5 + $0x1d0] sm:$0xff]  ;;  %v3311_v57 = vpack.c.bf16 %v2240_v9, %v2236_v7 }
 0x2e1   : > { %v2075_v31 = vld [vmem:[#allocation4 + $0x1e] sm:$0xff]  ;;  %2034 = vst.msk [vmem:[#allocation4 + $0x40] sm:$0xff] %vm2025_vm9, %v2017_v27  ;;  %v2003_v19 = vadd.f32 %v2813_v51, %v1941_v30  ;;  %v2191_v51 = vld [vmem:[%s4783_s5 + $0x130] sm:$0xff] }
 0x2e2   : > { %v2083_v12 = vmax.f32 %v2067_v26, %v2075_v31  ;;  %v2020_v14 = vmax.f32 %v2004_v0, 0.0  ;;  %v3289_v54 = vpack.c.bf16 %v2191_v51, %v2187_v63  ;;  %v894_v27 = vld [vmem:[#allocation2 + $0xab] sm:$0xff]  ;;  %v1023_v0 = vld [vmem:[#allocation2 + $0xb3] sm:$0xff]  ;;  %v970_v30 = vld [vmem:[#allocation2 + $0x9c] sm:$0xff] }
 0x2e3   : > { %v2019_v37 = vmax.f32 %v2003_v19, 0.0  ;;  %v2050_v38 = vld [vmem:[#allocation4 + $0x38] sm:$0x1f]  ;;  %v993_v26 = vld [vmem:[#allocation2 + $0x9d] sm:$0xff]  ;;  %v994_v19 = vld [vmem:[#allocation2 + $0xa5] sm:$0xff]  ;;  %v917_v48 = vmax.f32 %v871_v58, %v894_v27 }
 0x2e4   : > { %2037 = vst.msk [vmem:[#allocation4 + $0x58] sm:$0xff] %vm2025_vm9, %v2020_v14  ;;  %v2091_v42 = vmax.f32 %v2059_v32, %v2083_v12  ;;  %v2058_v50 = vld [vmem:[#allocation4 + $0x3a] sm:$0x1f]  ;;  %3290 = vmatpush1.bf16.msra.mxu1 %v3289_v54  ;;  %v1020_v29 = vld [vmem:[#allocation2 + $0xb2] sm:$0xff]  ;;  %v971_v31 = vld [vmem:[#allocation2 + $0xa4] sm:$0xff]  ;;  %v3301_v32 = vpack.c.bf16 %v2215_v22, %v2211_v20 }
 0x2e5   : > { %2036 = vst.msk [vmem:[#allocation4 + $0x50] sm:$0xff] %vm2025_vm9, %v2019_v37  ;;  %3292 = vmatprep.subr.bf16.mxu1 %v3291_v59  ;;  %v2066_v25 = vmax.f32 %v2050_v38, %v2058_v50  ;;  %v2242_v12 = vld [vmem:[%s4783_s5 + $0x2c8] sm:$0xff]  ;;  %v2245_v37 = vld [vmem:[%s4783_s5 + $0x2e0] sm:$0xff]  ;;  %v1026_v35 = vmax.f32 %v1020_v29, %v1023_v0  ;;  %v872_v38 = vld [vmem:[#allocation2 + $0xb2] sm:$0x1]  ;;  %v1016_v59 = vmax.f32 %v970_v30, %v993_v26 }
 0x2e6   : > { %2099 = vst.msk [vmem:[#allocation5] sm:$0xff] %vm2025_vm9, %v2091_v42  ;;  %v2246_v14 = vld [vmem:[%s4783_s5 + $0x2e8] sm:$0xff]  ;;  %v2224_v42 = vld [vmem:[%s4783_s5 + $0x238] sm:$0xff]  ;;  %v3269_v23 = vpack.c.bf16 %v2245_v37, %v2241_v33  ;;  %v895_v63 = vld [vmem:[#allocation2 + $0xb3] sm:$0x1]  ;;  %v1017_v60 = vmax.f32 %v971_v31, %v994_v19  ;;  %v1019_v26 = vmax.f32 %v973_v44, %v996_v11 }
 0x2e7   : > { %v3267_v36 = vpack.c.bf16 %v2246_v14, %v2242_v12  ;;  %v3303_v45 = vpack.c.bf16 %v2224_v42, %v2220_v39  ;;  %v2232_v50 = vld [vmem:[%s4783_s5 + $0x278] sm:$0xff]  ;;  %v921_v51 = vld [vmem:[#allocation2 + $0xc0] sm:$0x1]  ;;  %v924_v54 = vld [vmem:[#allocation2 + $0xc1] sm:$0x1]  ;;  %v918_v10 = vmax.f32 %v872_v38, %v895_v63 }
 0x2e8   : > { %3294 = vmatpush1.bf16.msra.mxu1 %v3293_v21  ;;  %v3307_v53 = vpack.c.bf16 %v2232_v50, %v2228_v47  ;;  %v1024_v21 = vld [vmem:[#allocation2 + $0xbb] sm:$0xff]  ;;  %v927_v40 = vmax.f32 %v921_v51, %v924_v54  ;;  %v972_v20 = vld [vmem:[#allocation2 + $0xac] sm:$0xff]  ;;  %v3552_v47 = vmov 1966171168   ;;  %v1114_v51 = vpop.permute.xlu1 %1113 }
 0x2e9   : > { %3296 = vmatprep.subr.bf16.mxu1 %v3295_v41  ;;  %3268 = vmatprep.subr.bf16.mxu0 %v3267_v36  ;;  %v3309_v41 = vpack.c.bf16 %v2231_v62, %v2227_v56  ;;  %v995_v58 = vld [vmem:[#allocation2 + $0xad] sm:$0xff]  ;;  %v2244_v29 = vld [vmem:[%s4783_s5 + $0x2d8] sm:$0xff] }
 0x2ea   : > { %3270 = vmatpush1.bf16.msra.mxu0 %v3269_v23  ;;  %v2248_v0 = vld [vmem:[%s4783_s5 + $0x2f8] sm:$0xff]  ;;  %v950_v30 = vmax.f32 %v918_v10, %v927_v40  ;;  %v2243_v12 = vld [vmem:[%s4783_s5 + $0x2d0] sm:$0xff]  ;;  %v1018_v33 = vmax.f32 %v972_v20, %v995_v58  ;;  %v2450_v23 = vld [vmem:[%s4785_s7 + $0x80] sm:$0xff] }
 0x2eb   : > { %v2247_v14 = vld [vmem:[%s4783_s5 + $0x2f0] sm:$0xff]  ;;  %v2252_v42 = vld [vmem:[%s4783_s5 + $0x318] sm:$0xff]  ;;  %v800_v63 = vld [vmem:[#allocation2 + $0xa7] sm:$0xff] }
 0x2ec   : > { %v2074_v61 = vld [vmem:[#allocation4 + $0x54] sm:$0x1f]  ;;  %3298 = vmatpush1.bf16.msra.mxu1 %v3297_v8  ;;  %v1025_v8 = vld [vmem:[#allocation2 + $0xc3] sm:$0x1]  ;;  %v3317_v39 = vpack.c.bf16 %v2247_v14, %v2243_v12  ;;  %v711_v9 = vld [vmem:[#allocation2 + $0xb0] sm:$0x1] }
 0x2ed   : > { %v2082_v52 = vld [vmem:[#allocation4 + $0x56] sm:$0x1f]  ;;  %v2109_v1 = vld [vmem:[#allocation5 + $0x4] sm:$0x1]  ;;  %3300 = vmatprep.subr.bf16.mxu1 %v3299_v18  ;;  %v778_v38 = vld [vmem:[#allocation2 + $0xae] sm:$0xff] }
 0x2ee   : > { %v2090_v2 = vmax.f32 %v2074_v61, %v2082_v52  ;;  %2113 = vrot.lane.b32.xlu0 %v2109_v1, %s3549_s29  ;;  %v1021_v61 = vld [vmem:[#allocation2 + $0xba] sm:$0xff]  ;;  %v2250_v52 = vld [vmem:[%s4783_s5 + $0x308] sm:$0xff]  ;;  %v1048_v1 = vmax.f32 %v1016_v59, %v917_v48  ;;  %v2239_v18 = vld [vmem:[%s4783_s5 + $0x2b0] sm:$0xff] }
 0x2ef   : > { %2336 = vmatprep.subr.mxu0 %v2250_v52  ;;  %v1027_v27 = vmax.f32 %v1021_v61, %v1024_v21  ;;  %v3313_v19 = vpack.c.bf16 %v2239_v18, %v2235_v13  ;;  %v801_v50 = vld [vmem:[#allocation2 + $0xaf] sm:$0xff]  ;;  %v802_v7 = vld [vmem:[#allocation2 + $0xb7] sm:$0xff]  ;;  %v803_v44 = vld [vmem:[#allocation2 + $0xbf] sm:$0x1] }
 0x2f0   : > { %v2098_v16 = vmax.f32 %v2066_v25, %v2090_v2  ;;  %3302 = vmatpush1.bf16.msra.mxu1 %v3301_v32  ;;  %v1049_v25 = vmax.f32 %v1017_v60, %v1026_v35  ;;  %v926_v2 = vmax.f32 %v920_v43, %v923_v49  ;;  %2337 = vmatpush1.msra.mxu0 %v2249_v5  ;;  %v2251_v43 = vld [vmem:[%s4783_s5 + $0x310] sm:$0xff]  ;;  %v2135_v35 = vlaneseq  ;;  %v777_v49 = vld [vmem:[#allocation2 + $0xa6] sm:$0xff]  ;;  %v2108_v60 = vld [vmem:[#allocation5] sm:$0x1] }
 0x2f1   : > { %3304 = vmatprep.subr.bf16.mxu1 %v3303_v45  ;;  %v3315_v32 = vpack.c.bf16 %v2248_v0, %v2244_v29  ;;  %v1050_v36 = vmax.f32 %v1018_v33, %v1027_v27  ;;  %v2451_v45 = vld [vmem:[%s4785_s7 + $0x88] sm:$0xff]  ;;  %v823_v59 = vmax.f32 %v777_v49, %v800_v63  ;;  %v779_v5 = vld [vmem:[#allocation2 + $0xb6] sm:$0xff]  ;;  %v734_v10 = vld [vmem:[#allocation2 + $0xb1] sm:$0x1] }
 0x2f2   : > { %2107 = vst.msk [vmem:[#allocation5 + $0x38] sm:$0x1f] %vm2106_vm10, %v2098_v16  ;;  %v1022_v16 = vld [vmem:[#allocation2 + $0xc2] sm:$0x1]  ;;  %v949_v22 = vmax.f32 %v917_v48, %v926_v2  ;;  %v3319_v34 = vpack.c.bf16 %v2451_v45, %v2450_v23  ;;  %v2133_v48 = vunpack.c.l.s4 %v3552_v47  ;;  %v780_v40 = vld [vmem:[#allocation2 + $0xbe] sm:$0x1]  ;;  %v825_v18 = vmax.f32 %v779_v5, %v802_v7 }
 0x2f3   : > { %v1028_v31 = vmax.f32 %v1022_v16, %v1025_v8  ;;  %vm2149_vm13 = vcmp.lt.s32.totalorder %v2135_v35, 200  ;;  %v757_v20 = vmax.f32 %v711_v9, %v734_v10  ;;  %v2434_v14 = vld [vmem:[%s4785_s7] sm:$0xff]  ;;  %v2467_v63 = vld [vmem:[%s4785_s7 + $0x108] sm:$0xff] }
 0x2f4   : > { %3306 = vmatpush1.bf16.msra.mxu1 %v3305_v46  ;;  %3320 = vmatprep.subr.bf16.mxu0 %v3319_v34  ;;  %v2134_v46 = vunpack.c.0.s8 %v2133_v48  ;;  %v848_v29 = vmax.f32 %v3977_v17, %v825_v18  ;;  %v2436_v48 = vld [vmem:[%s4785_s7 + $0x10] sm:$0xff]  ;;  %v2454_v49 = vld [vmem:[%s4785_s7 + $0xa0] sm:$0xff]  ;;  %v2459_v7 = vld [vmem:[%s4785_s7 + $0xc8] sm:$0xff] }
 0x2f5   : > { %3308 = vmatprep.subr.bf16.mxu1 %v3307_v53  ;;  %v1051_v37 = vmax.f32 %v1019_v26, %v1028_v31  ;;  %v2458_v5 = vld [vmem:[%s4785_s7 + $0xc0] sm:$0xff]  ;;  %v2473_v18 = vld [vmem:[%s4785_s7 + $0x138] sm:$0xff] }
 0x2f6   : > { %v2470_v10 = vld [vmem:[%s4785_s7 + $0x120] sm:$0xff] }
 0x2f8   : > { %3310 = vmatpush1.bf16.msra.mxu1 %v3309_v41 }
 0x2f9   : > { %v2110_v24 = vld [vmem:[#allocation5 + $0x38] sm:$0x1]  ;;  %v2111_v55 = vld [vmem:[#allocation5 + $0x3c] sm:$0x1]  ;;  %3312 = vmatprep.subr.bf16.mxu1 %v3311_v57 }
 0x2fa   : > { %2117 = vrot.lane.b32.xlu1 %v2110_v24, %s3550_s24  ;;  %2121 = vrot.lane.b32.xlu0 %v2111_v55, %s3551_s25  ;;  %s4797_s25 = smov 20   ;;  %v4490_v24 = vshrl.u32 %v2135_v35, 7  ;;  %v824_v55 = vmax.f32 %v778_v38, %v801_v50  ;;  %v2437_v35 = vld [vmem:[%s4785_s7 + $0x18] sm:$0xff]  ;;  %v2455_v38 = vld [vmem:[%s4785_s7 + $0xa8] sm:$0xff]  ;;  %s3479_s24 = scalar_lea.vmem %s4738_s17, 16 }
 0x2fb   : > { %v2466_v50 = vld [vmem:[%s4785_s7 + $0x100] sm:$0xff]  ;;  %p3480_p11 = scmp.ne.s32.totalorder %s4738_s17, %s3479_s24 }
 0x2fc   : > { %3314 = vmatpush1.bf16.msra.mxu1 %v3313_v19  ;;  %v2137_v61 = vsub.s32 %v2134_v46, %v4490_v24  ;;  %v2261_v12 = vsub.s32 1, %v4490_v24 }
 0x2fd   : > { %3316 = vmatprep.subr.bf16.mxu1 %v3315_v32  ;;  %v2257_v32 = vsub.s32 0, %v4490_v24  ;;  %p3481_p12 = pnand %p3480_p11, %p3642_p5 }
 0x2fe   : > { %1205 = vrot.lane.b32.xlu1 %v1048_v1, %s4796_s28  ;;  %1207 = vrot.lane.b32.xlu0 %v1049_v25, %s4796_s28  ;;  %v847_v1 = vmax.f32 %v3966_v28, %v824_v55  ;;  %v846_v25 = vmax.f32 %v3959_v4, %v823_v59  ;;  %v3327_v59 = vpack.c.bf16 %v2455_v38, %v2454_v49  ;;  %v2488_v38 = vld [vmem:[%s4785_s7 + $0x1b0] sm:$0xff] }
 0x2ff   : > { %p3482_p13 = pneg %p3481_p12 }
 0x300   : > { %3318 = vmatpush1.bf16.msra.mxu1 %v3317_v39  ;;  %v1256_v11 = vsel %vm662_vm3, %v847_v1, %v1116_v15  ;;  %v1255_v16 = vsel %vm662_vm3, %v846_v25, %v1114_v51  ;;  %v2435_v39 = vld [vmem:[%s4785_s7 + $0x8] sm:$0xff]  ;;  %v3325_v51 = vpack.c.bf16 %v2437_v35, %v2436_v48  ;;  %v2440_v25 = vld [vmem:[%s4785_s7 + $0x30] sm:$0xff]  ;;  %v2445_v35 = vld [vmem:[%s4785_s7 + $0x58] sm:$0xff] }
 0x301   : > { %2407 = vmatprep.subr.mxu1 %v2252_v42  ;;  %v2452_v42 = vld [vmem:[%s4785_s7 + $0x90] sm:$0xff]  ;;  %v3321_v15 = vpack.c.bf16 %v2435_v39, %v2434_v14  ;;  %v2483_v39 = vld [vmem:[%s4785_s7 + $0x188] sm:$0xff] }
 0x302   : > { %1117 = vrot.lane.b32.xlu1 %v949_v22, %s4797_s25  ;;  %1119 = vrot.lane.b32.xlu0 %v950_v30, %s4797_s25  ;;  %v826_v22 = vmax.f32 %v780_v40, %v803_v44  ;;  %v2471_v44 = vld [vmem:[%s4785_s7 + $0x128] sm:$0xff]  ;;  %v2444_v48 = vld [vmem:[%s4785_s7 + $0x50] sm:$0xff]  ;;  %s3483_s25 = sshll.u32 %s3553_s13, 4  ;;  %s3484_s25 = int_to_ptr.vmem [resolvable:$false] %s3483_s25 }
 0x303   : > { %v3341_v49 = vpack.c.bf16 %v2445_v35, %v2444_v48  ;;  %s3485_s23 = scalar_lea.vmem %s3484_s25, 32  ;;  %p3486_p0 = scmp.lt.s32.totalorder %s4738_s17, %s3484_s25 }
 0x304   : > { %2408 = vmatpush1.msra.mxu1 %v2251_v43  ;;  %v849_v0 = vmax.f32 %v757_v20, %v826_v22  ;;  %v2453_v43 = vld [vmem:[%s4785_s7 + $0x98] sm:$0xff]  ;;  %p3487_p1 = scmp.lt.s32.totalorder %s3485_s23, %s3479_s24 }
 0x305   : > { %3351 = vmatprep.subr.bf16.mxu1 %v3543_v3  ;;  %v3323_v47 = vpack.c.bf16 %v2453_v43, %v2452_v42  ;;  %v2484_v43 = vld [vmem:[%s4785_s7 + $0x190] sm:$0xff] }
 0x306   : > { %1209 = vrot.lane.b32.xlu1 %v1050_v36, %s4796_s28  ;;  %1211 = vrot.lane.b32.xlu0 %v1051_v37, %s4796_s28  ;;  %s4736_s28 = scalar_lea.hbm %s4787_s9, %s2818_s14  ;;  %p3488_p2 = por %p3487_p1, %p3486_p0 }
 0x308   : > { %p3489_p3 = pnand %p3488_p2, %p3482_p13 }
 0x360   : > { %v2114_v54 = vpop.permute.xlu0 %2113 }
 0x361   : > { %v2124_v53 = vsel %vm2025_vm9, %v2108_v60, %v2114_v54  ;;  %v2438_v54 = vld [vmem:[%s4785_s7 + $0x20] sm:$0xff]  ;;  %v2439_v60 = vld [vmem:[%s4785_s7 + $0x28] sm:$0xff] }
 0x36c   : > { %v2118_v56 = vpop.permute.xlu1 %2117  ;;  %v2122_v21 = vpop.permute.xlu0 %2121 }
 0x36d   : > { %v2126_v62 = vsel %vm2125_vm11, %v2124_v53, %v2118_v56  ;;  %v2128_v52 = vsel %vm2127_vm12, %v2118_v56, %v2122_v21  ;;  %v2456_v53 = vld [vmem:[%s4785_s7 + $0xb0] sm:$0xff]  ;;  %v2457_v56 = vld [vmem:[%s4785_s7 + $0xb8] sm:$0xff] }
 0x36e   : > { %v2131_v2 = vcombine.low %v2126_v62, %v2128_v52  ;;  %v2468_v21 = vld [vmem:[%s4785_s7 + $0x110] sm:$0xff]  ;;  %v3329_v62 = vpack.c.bf16 %v2439_v60, %v2438_v54  ;;  %v2469_v52 = vld [vmem:[%s4785_s7 + $0x118] sm:$0xff]  ;;  %v3331_v1 = vpack.c.bf16 %v2457_v56, %v2456_v53  ;;  %v2463_v54 = vld [vmem:[%s4785_s7 + $0xe8] sm:$0xff] }
 0x36f   : > { %v3355_v9 = vpack.c.bf16 %v2469_v52, %v2468_v21  ;;  %v2490_v53 = vld [vmem:[%s4785_s7 + $0x1c0] sm:$0xff]  ;;  %v2491_v56 = vld [vmem:[%s4785_s7 + $0x1c8] sm:$0xff]  ;;  %v2464_v21 = vld [vmem:[%s4785_s7 + $0xf0] sm:$0xff] }
 0x370   : > { %v2138_v41 = vrot.slane %v2131_v2, %v2137_v61  ;;  %v1206_v8 = vpop.permute.xlu1 %1205  ;;  %v1208_v57 = vpop.permute.xlu0 %1207  ;;  %v2441_v2 = vld [vmem:[%s4785_s7 + $0x38] sm:$0xff] }
 0x371   : > { %v1279_v13 = vsel %vm1259_vm7, %v1255_v16, %v1206_v8  ;;  %v1280_v28 = vsel %vm1259_vm7, %v1256_v11, %v1208_v57  ;;  %v3333_v40 = vpack.c.bf16 %v2441_v2, %v2440_v25  ;;  %v3335_v11 = vpack.c.bf16 %v2459_v7, %v2458_v5  ;;  %v2442_v16 = vld [vmem:[%s4785_s7 + $0x40] sm:$0xff]  ;;  %v2460_v8 = vld [vmem:[%s4785_s7 + $0xd0] sm:$0xff]  ;;  %v2461_v57 = vld [vmem:[%s4785_s7 + $0xd8] sm:$0xff] }
 0x372   : > { %v2145_v4 = vrot.slane %v2138_v41, %v2137_v61  ;;  %1303 = vst.msk [vmem:[#allocation3 + $0x98] sm:$0xff] %vm1283_vm8, %v1279_v13  ;;  %1304 = vst.msk [vmem:[#allocation3 + $0xa0] sm:$0xff] %vm1283_vm8, %v1280_v28  ;;  %v3352_v61 = vpack.c.bf16 %v2467_v63, %v2466_v50  ;;  %v2443_v41 = vld [vmem:[%s4785_s7 + $0x48] sm:$0xff]  ;;  %v3358_v13 = vpack.c.bf16 %v2471_v44, %v2470_v10  ;;  %v2489_v50 = vld [vmem:[%s4785_s7 + $0x1b8] sm:$0xff] }
 0x373   : > { %v3337_v28 = vpack.c.bf16 %v2443_v41, %v2442_v16  ;;  %v3339_v20 = vpack.c.bf16 %v2461_v57, %v2460_v8  ;;  %v3385_v63 = vpack.c.bf16 %v2489_v50, %v2488_v38  ;;  %v2449_v25 = vld [vmem:[%s4785_s7 + $0x78] sm:$0xff]  ;;  %v2492_v5 = vld [vmem:[%s4785_s7 + $0x1d0] sm:$0xff]  ;;  %v2494_v10 = vld [vmem:[%s4785_s7 + $0x1e0] sm:$0xff] }
 0x374   : > { %2151 = vst.msk [vmem:[#allocation6] sm:$0x3] %vm2149_vm13, %v2145_v4  ;;  %v1118_v58 = vpop.permute.xlu1 %1117  ;;  %v1120_v27 = vpop.permute.xlu0 %1119  ;;  %v2472_v4 = vld [vmem:[%s4785_s7 + $0x130] sm:$0xff]  ;;  %v2493_v7 = vld [vmem:[%s4785_s7 + $0x1d8] sm:$0xff] }
 0x375   : > { %v1257_v30 = vsel %vm662_vm3, %v848_v29, %v1118_v58  ;;  %v1258_v26 = vsel %vm662_vm3, %v849_v0, %v1120_v27  ;;  %v3361_v22 = vpack.c.bf16 %v2473_v18, %v2472_v4  ;;  %v2474_v58 = vld [vmem:[%s4785_s7 + $0x140] sm:$0xff]  ;;  %v2475_v27 = vld [vmem:[%s4785_s7 + $0x148] sm:$0xff]  ;;  %v2476_v0 = vld [vmem:[%s4785_s7 + $0x150] sm:$0xff]  ;;  %v2275_v4 = vsub.s32 2, %v4490_v24 }
 0x376   : > { %v3364_v29 = vpack.c.bf16 %v2475_v27, %v2474_v58 }
 0x378   : > { %v1210_v31 = vpop.permute.xlu1 %1209  ;;  %v1212_v19 = vpop.permute.xlu0 %1211 }
 0x379   : > { %v1281_v33 = vsel %vm1259_vm7, %v1257_v30, %v1210_v31  ;;  %v1282_v17 = vsel %vm1259_vm7, %v1258_v26, %v1212_v19  ;;  %v1761_v36 = vld [vmem:[#allocation3 + $0x98] sm:$0xff]  ;;  %v1762_v37 = vld [vmem:[#allocation3 + $0xa0] sm:$0xff]  ;;  %v2477_v30 = vld [vmem:[%s4785_s7 + $0x158] sm:$0xff] }
 0x37a   : > { %1305 = vst.msk [vmem:[#allocation3 + $0xa8] sm:$0xff] %vm1283_vm8, %v1281_v33  ;;  %3157 = vmatprep.mubr.msk.f32.mxu1 %vm1283_vm8, %v1761_v36  ;;  %v3367_v26 = vpack.c.bf16 %v2477_v30, %v2476_v0  ;;  %v2478_v31 = vld [vmem:[%s4785_s7 + $0x160] sm:$0xff]  ;;  %v2479_v19 = vld [vmem:[%s4785_s7 + $0x168] sm:$0xff]  ;;  %v2480_v33 = vld [vmem:[%s4785_s7 + $0x170] sm:$0xff] }
 0x37b   : > { %1307 = vst.msk [vmem:[#allocation3 + $0xb0] sm:$0x1] %vm1306_vm14, %v1282_v17  ;;  %3158 = vmatmul.mubr.msk.f32.gmra.mrb[12].mxu1 %vm1283_vm8, %v1762_v37  ;;  %v2152_v23 = vld [vmem:[#allocation6] sm:$0x3]  ;;  %v3370_v14 = vpack.c.bf16 %v2479_v19, %v2478_v31  ;;  %v2481_v17 = vld [vmem:[%s4785_s7 + $0x178] sm:$0xff] }
 0x37c   : > { %v2258_v45 = vrot.slane %v2152_v23, %v2257_v32  ;;  %v2262_v34 = vrot.slane %v2152_v23, %v2261_v12  ;;  %v3373_v36 = vpack.c.bf16 %v2481_v17, %v2480_v33  ;;  %v2482_v37 = vld [vmem:[%s4785_s7 + $0x180] sm:$0xff]  ;;  %v2485_v23 = vld [vmem:[%s4785_s7 + $0x198] sm:$0xff] }
 0x37d   : > { %v3376_v42 = vpack.c.bf16 %v2483_v39, %v2482_v37 }
 0x37e   : > { %2814 = vmatprep.mubr.msk.f32.mxu0 %vm2285_vm15, %v2262_v34 }
 0x37f   : > { %2353 = vmatmul.mubr.f32.vlgmr.msra.gmra.mrb[50].mxu0 %v2258_v45 }
 0x380   : > { %3322 = vmatpush3.bf16.msra.mxu0 %v3321_v15  ;;  %v2487_v15 = vld [vmem:[%s4785_s7 + $0x1a8] sm:$0xff] }
 0x381   : > { %v1763_v46 = vld [vmem:[#allocation3 + $0xa8] sm:$0xff]  ;;  %3324 = vmatprep.subr.bf16.mxu0 %v3323_v47 }
 0x382   : > { %v1764_v55 = vld [vmem:[#allocation3 + $0xb0] sm:$0x1]  ;;  %3160 = vmatprep.mubr.msk.f32.mxu1 %vm1283_vm8, %v1763_v46 }
 0x383   : > { %3161 = vmatmul.mubr.msk.f32.gmra.mrb[14].mxu1 %vm1283_vm8, %v1764_v55  ;;  %v2446_v55 = vld [vmem:[%s4785_s7 + $0x60] sm:$0xff] }
 0x384   : > { %2815 = vmatprep.mubr.msk.f32.mxu1 %vm2285_vm15, %v2262_v34  ;;  %3326 = vmatpush3.bf16.msra.mxu0 %v3325_v51  ;;  %v2486_v34 = vld [vmem:[%s4785_s7 + $0x1a0] sm:$0xff] }
 0x385   : > { %3328 = vmatprep.subr.bf16.mxu0 %v3327_v59  ;;  %v3382_v47 = vpack.c.bf16 %v2487_v15, %v2486_v34  ;;  %v2462_v51 = vld [vmem:[%s4785_s7 + $0xe0] sm:$0xff]  ;;  %v2447_v59 = vld [vmem:[%s4785_s7 + $0x68] sm:$0xff] }
 0x386   : > { %v3343_v46 = vpack.c.bf16 %v2463_v54, %v2462_v51  ;;  %v3345_v60 = vpack.c.bf16 %v2447_v59, %v2446_v55 }
 0x387   : > { %2424 = vmatmul.mubr.f32.vlgmr.msra.gmra.mrb[16].mxu1 %v2258_v45  ;;  %v3379_v45 = vpack.c.bf16 %v2485_v23, %v2484_v43 }
 0x388   : > { %3353 = vmatpush1.bf16.msra.mxu1 %v3352_v61  ;;  %3330 = vmatpush3.bf16.msra.mxu0 %v3329_v62  ;;  %v3388_v61 = vpack.c.bf16 %v2491_v56, %v2490_v53  ;;  %v2465_v62 = vld [vmem:[%s4785_s7 + $0xf8] sm:$0xff] }
 0x389   : > { %3354 = vmatprep.subr.bf16.mxu1 %v3543_v3  ;;  %3332 = vmatprep.subr.bf16.mxu0 %v3331_v1  ;;  %v3347_v52 = vpack.c.bf16 %v2465_v62, %v2464_v21  ;;  %v2448_v1 = vld [vmem:[%s4785_s7 + $0x70] sm:$0xff] }
 0x38a   : > { %v3349_v2 = vpack.c.bf16 %v2449_v25, %v2448_v1 }
 0x38c   : > { %3356 = vmatpush1.bf16.msra.mxu1 %v3355_v9  ;;  %3334 = vmatpush3.bf16.msra.mxu0 %v3333_v40  ;;  %v3391_v9 = vpack.c.bf16 %v2493_v7, %v2492_v5  ;;  %v2495_v40 = vld [vmem:[%s4785_s7 + $0x1e8] sm:$0xff] }
 0x38d   : > { %3357 = vmatprep.subr.bf16.mxu1 %v3543_v3  ;;  %3336 = vmatprep.subr.bf16.mxu0 %v3335_v11  ;;  %v3394_v44 = vpack.c.bf16 %v2495_v40, %v2494_v10  ;;  %v2496_v11 = vld [vmem:[%s4785_s7 + $0x1f0] sm:$0xf] }
 0x390   : > { %3359 = vmatpush1.bf16.msra.mxu1 %v3358_v13  ;;  %3338 = vmatpush3.bf16.msra.mxu0 %v3337_v28 }
 0x391   : > { %3360 = vmatprep.subr.bf16.mxu1 %v3543_v3  ;;  %3340 = vmatprep.subr.bf16.mxu0 %v3339_v20  ;;  %v2279_v20 = vsub.s32 3, %v4490_v24 }
 0x394   : > { %3362 = vmatpush1.bf16.msra.mxu1 %v3361_v22  ;;  %3342 = vmatpush3.bf16.msra.mxu0 %v3341_v49 }
 0x395   : > { %3363 = vmatprep.subr.bf16.mxu1 %v3543_v3  ;;  %3344 = vmatprep.subr.bf16.mxu0 %v3343_v46 }
 0x398   : > { %3365 = vmatpush1.bf16.msra.mxu1 %v3364_v29  ;;  %3346 = vmatpush3.bf16.msra.mxu0 %v3345_v60 }
 0x399   : > { %3366 = vmatprep.subr.bf16.mxu1 %v3543_v3  ;;  %3348 = vmatprep.subr.bf16.mxu0 %v3347_v52 }
 0x39c   : > { %3368 = vmatpush1.bf16.msra.mxu1 %v3367_v26  ;;  %3350 = vmatpush3.bf16.msra.mxu0 %v3349_v2 }
 0x39d   : > { %3369 = vmatprep.subr.bf16.mxu1 %v3543_v3 }
 0x3a0   : > { %3371 = vmatpush1.bf16.msra.mxu1 %v3370_v14 }
 0x3a1   : > { %3372 = vmatprep.subr.bf16.mxu1 %v3543_v3 }
 0x3a4   : > { %3374 = vmatpush1.bf16.msra.mxu1 %v3373_v36  ;;  %v2497_v36 = vld [vmem:[%s4786_s8] sm:$0x1] }
 0x3a5   : > { %3375 = vmatprep.subr.bf16.mxu1 %v3543_v3 }
 0x3a8   : > { %3377 = vmatpush1.bf16.msra.mxu1 %v3376_v42 }
 0x3a9   : > { %3378 = vmatprep.subr.bf16.mxu1 %v3543_v3 }
 0x3ac   : > { %3380 = vmatpush1.bf16.msra.mxu1 %v3379_v45 }
 0x3ad   : > { %3381 = vmatprep.subr.bf16.mxu1 %v3543_v3 }
 0x3b0   : > { %3383 = vmatpush1.bf16.msra.mxu1 %v3382_v47 }
 0x3b1   : > { %3384 = vmatprep.subr.bf16.mxu1 %v3543_v3 }
 0x3b4   : > { %3386 = vmatpush1.bf16.msra.mxu1 %v3385_v63 }
 0x3b5   : > { %3387 = vmatprep.subr.bf16.mxu1 %v3543_v3 }
 0x3b8   : > { %3389 = vmatpush1.bf16.msra.mxu1 %v3388_v61 }
 0x3b9   : > { %3390 = vmatprep.subr.bf16.mxu1 %v3543_v3 }
 0x3bc   : > { %3392 = vmatpush1.bf16.msra.mxu1 %v3391_v9 }
 0x3bd   : > { %3393 = vmatprep.subr.bf16.mxu1 %v3543_v3  ;;  %v2253_v3 = vld [vmem:[%s4784_s6] sm:$0xf] }
 0x3be   : > { %v2268_v8 = vrot.slane %v2253_v3, %v2257_v32  ;;  %v2272_v57 = vrot.slane %v2253_v3, %v2261_v12  ;;  %v2276_v0 = vrot.slane %v2253_v3, %v2275_v4  ;;  %v2280_v30 = vrot.slane %v2253_v3, %v2279_v20 }
 0x3c0   : > { %3395 = vmatpush1.bf16.msra.mxu1 %v3394_v44 }
 0x3c1   : > { %2635 = vmatprep.subr.mxu1 %v3545_v6 }
 0x3c4   : > { %2816 = vmatpush1.msk.msra.mxu1 %vm443_vm1, %v2496_v11 }
 0x44e   : > { %v3159_v16 = vpop.f32.mrb[12].mxu1 }
 0x44f   : > { %v1951_v41 = vpop.f32.mrb[13].mxu1 }
 0x452   : > { %v2354_v13 = vpop.f32.mrb[50].mxu0 }
 0x453   : > { %v2355_v6 = vadd.f32 %v2354_v13, %v2268_v8  ;;  %v2356_v28 = vpop.f32.mrb[51].mxu0 }
 0x454   : > { %v2357_v18 = vadd.f32 %v2356_v28, %v2272_v57 }
 0x455   : > { %v2430_v27 = vmax.f32 %v2355_v6, 0.0 }
 0x456   : > { %v2431_v22 = vmax.f32 %v2357_v18, 0.0  ;;  %v3162_v58 = vpop.f32.mrb[14].mxu1 }
 0x457   : > { %v1961_v29 = vpop.f32.mrb[15].mxu1 }
 0x458   : > { %2569 = vmatprep.mubr.f32.mxu0 %v2431_v22 }
 0x459   : > { %2570 = vmatmul.mubr.f32.vlgmr.msra.gmra.mrb[52].mxu0 %v2430_v27 }
 0x45a   : > { %v2425_v32 = vpop.f32.mrb[16].mxu1 }
 0x45b   : > { %v2426_v12 = vadd.f32 %v2425_v32, %v2276_v0  ;;  %v2427_v26 = vpop.f32.mrb[17].mxu1 }
 0x45c   : > { %v2428_v31 = vadd.f32 %v2427_v26, %v2280_v30 }
 0x45d   : > { %v2432_v14 = vmax.f32 %v2426_v12, 0.0 }
 0x45e   : > { %v2433_v19 = vmax.f32 %v2428_v31, 0.0 }
 0x460   : > { %2817 = vmatprep.mubr.msk.f32.mxu1 %vm2498_vm0, %v2433_v19 }
 0x461   : > { %2640 = vmatmul.mubr.f32.vlgmr.msra.gmra.mrb[18].mxu1 %v2432_v14 }
 0x52c   : > { %v2955_v24 = vpop.f32.mrb[52].mxu0 }
 0x52d   : > { %v2956_v33 = vpop.f32.mrb[53].mxu0 }
 0x52e   : > { %v2957_v17 = vadd.f32 %v2956_v33, %v2955_v24 }
 0x530   : > { %v2572_v37 = vadd.f32 %v2957_v17, %v2497_v36 }
 0x534   : > { %v2641_v39 = vpop.f32.mrb[18].mxu1 }
 0x535   : > { %v2642_v42 = vadd.f32 %v2641_v39, %v2572_v37  ;;  %v2643_v43 = vpop.f32.mrb[19].mxu1 }
 0x537   : > { %2645 = vst [vmem:[%s324_s16] sm:$0x1] %v2642_v42 }
 0x538   : > { %3492 = shalt.err (!%p3489_p3)
}
 0x539   : > { %s3493_s27 = scalar_lea.hbm %s4736_s28, 16  ;;  %s3497_s16 = scalar_lea.hbm %s4787_s9, 32 }
 0x53a   : > { %p3494_p4 = scmp.ne.s32.totalorder %s4736_s28, %s3493_s27  ;;  %p3498_p9 = scmp.lt.u32.totalorder %s4736_s28, %s4787_s9 }
 0x53b   : > { %p3499_p10 = scmp.lt.u32.totalorder %s3497_s16, %s3493_s27  ;;  %p3501_p12 = scmp.lt.u32.totalorder %s3493_s27, %s4736_s28 }
 0x53c   : > { %p3495_p7 = pnand %p3494_p4, %p3642_p5 }
 0x53d   : > { %p3500_p11 = por %p3499_p10, %p3498_p9 }
 0x53e   : > { %p3496_p8 = pneg %p3495_p7 }
 0x53f   : > { %p3502_p13 = por %p3501_p12, %p3500_p11 }
 0x541   : > { %p3503_p0 = pnand %p3502_p13, %p3496_p8 }
 0x543   : > { %3506 = shalt.err (!%p3503_p0)
}
 0x544   : > { %3429 = dma.vmem_to_hbm [thread:$0]  (%p3642_p5), %s4738_s17, 16, %s4736_s28, %s2647_s22  }
 0x545 PF: > { %p3435_p1 = scmp.ge.s32.totalorder %s3541_s12, 2  ;;  %s2671_s24 = sand.u32 1, %s3529_s30  }
 0x546   : > { %s2672_s13 = scalar_lea.sflag [#allocation8], %s2671_s24 }
 0x547   : > { %p3432_p2 = pnand %p3435_p1, %p3646_p6 }
 0x549   : > { %3524 = dma.done.wait (!%p3432_p2), %s2672_s13, 16  }
 0x54a   : > { %3526 = vsyncadd (!%p3432_p2), %s2672_s13, 4294967280  ;;  %p19_p3 = scmp.ge.s32.totalorder %s3629_s15, 4   ;;  %s4798_s30 = smov %s3533_s10 }
 0x54b   : > { %s4799_s10 = smov %s3537_s11  ;;  %s4800_s11 = smov %s3640_s18 }
 0x54c   : > { %s4801_s12 = smov %s3629_s15  ;;  %21 = sbr.rel (!%p19_p3) target bundleno = 3 (0x3), region = 93 }
 0x553   :  { %2676 = vsyncpa [#allocation8], 1 }
 0x554   :  { %2678 = vsyncpa [#allocation8 + $0x1], 1 }

</bundles_post_ra>
